<compile_context>
chip_gen: v7x
topology: tpu7x:2x2x1
jax: 0.10.0
libtpu: 0.0.40
codegen_flags: <defaults>
</compile_context>

<pallas_src>
import functools

import jax
import jax.numpy as jnp
import numpy as np
from jax import lax
from jax.experimental import pallas as pl
from jax.experimental.pallas import tpu as pltpu

LANES = 128
MAX_BLOCK_ROWS = 2048  # 2048*128*4B = 1 MiB f32 block; in+out double-buffered ~ 4 MiB VMEM
CHUNK_ROWS = 64        # 64x128 f32 = 8 vregs for x + 16 for the two accumulators


def _pwl_kernel(t_ref, d_ref, c_ref, x_ref, o_ref, *,
                num_breakpoints, chunk_rows, block_rows):
    """PWL + clip on one [block_rows, LANES] tile, processed in vreg-resident row chunks.

    t_ref: (K,)  sorted breakpoints               (SMEM)
    d_ref: (K,)  slope deltas s_{k+1} - s_k       (SMEM)
    c_ref: (2,)  [c0 = bias - s0*t0 - sum(d*t), s0]  (SMEM)
    x_ref / o_ref: [block_rows, LANES] VMEM tiles (native dtype; compute in f32)
    """
    n_chunks = block_rows // chunk_rows   # block_rows is always a multiple of chunk_rows
    c0 = c_ref[0]
    s0 = c_ref[1]
    # Hoist all SMEM scalar reads out of the per-chunk loop (read once per grid step).
    t_vals = [t_ref[k] for k in range(num_breakpoints)]
    d_vals = [d_ref[k] for k in range(num_breakpoints)]

    def chunk_body(c, carry):
        start = pl.multiple_of(c * chunk_rows, chunk_rows)
        x = x_ref[pl.ds(start, chunk_rows), :].astype(jnp.float32)
        # y = c0 + s0*x + sum_k d_k * max(x, t_k); two interleaved accumulators (even/odd k)
        # halve the serial add-chain depth of the fully unrolled K-term sum.
        acc_a = c0 + s0 * x
        acc_b = jnp.zeros_like(x)
        for k in range(0, num_breakpoints - 1, 2):
            acc_a = acc_a + d_vals[k] * jnp.maximum(x, t_vals[k])
            acc_b = acc_b + d_vals[k + 1] * jnp.maximum(x, t_vals[k + 1])
        if num_breakpoints % 2:
            k = num_breakpoints - 1
            acc_a = acc_a + d_vals[k] * jnp.maximum(x, t_vals[k])
        y = jnp.clip(acc_a + acc_b, 0.0, 1.0)
        o_ref[pl.ds(start, chunk_rows), :] = y.astype(o_ref.dtype)
        return carry

    lax.fori_loop(0, n_chunks, chunk_body, 0)


def pwl_tone_mapping(x, x_positions, slopes, biases):
    """Pallas equivalent of PWLToneMapping.forward. Returns [out] like the torch module."""
    orig_shape = x.shape
    orig_dtype = x.dtype

    t = jnp.sort(x_positions[0]).astype(jnp.float32)        # (K,)  sorted breakpoints
    s = slopes[0].astype(jnp.float32)                        # (K+1,)
    bias = biases.astype(jnp.float32)[0]
    num_breakpoints = t.shape[0]
    delta = s[1:] - s[:-1]                                   # (K,) slope deltas
    # relu->max fold: c0 = bias - s0*t0 - sum_k d_k*t_k  (computed once in f32)
    c0 = bias - s[0] * t[0] - jnp.sum(delta * t)
    consts = jnp.stack([c0, s[0]])                           # (2,) [c0, s0]

    # Carry floating inputs through the kernel at native dtype (cast in-vreg); otherwise use f32.
    if jnp.issubdtype(orig_dtype, jnp.floating) and jnp.dtype(orig_dtype).itemsize in (2, 4):
        work_dtype = jnp.dtype(orig_dtype)
    else:
        work_dtype = jnp.dtype(jnp.float32)
    row_align = max(8, 32 // work_dtype.itemsize)            # sublane tile: 8 (f32) / 16 (bf16)

    flat = x.reshape(-1)
    if flat.dtype != work_dtype:
        flat = flat.astype(work_dtype)
    n = flat.shape[0]
    n_pad = pl.cdiv(n, LANES) * LANES
    if n_pad != n:                                           # skipped for typical NCHW sizes
        flat = jnp.pad(flat, (0, n_pad - n))
    rows = n_pad // LANES
    x_mat = flat.reshape(rows, LANES)                        # lane-dense [rows, 128]

    # Block sizing: big lane-dense blocks, but keep >= 2 grid steps whenever possible so the
    # "parallel" axis shards across both TensorCores on v7x. block_rows is always a multiple of
    # chunk_rows (so the in-kernel chunk loop needs no clamping); partial trailing grid blocks
    # are masked by Pallas.
    if rows > CHUNK_ROWS:
        chunk_rows = CHUNK_ROWS
        target = pl.cdiv(pl.cdiv(rows, 2), chunk_rows) * chunk_rows
        block_rows = min(MAX_BLOCK_ROWS, target)
    elif rows >= 2 * row_align:
        block_rows = pl.cdiv(pl.cdiv(rows, 2), row_align) * row_align
        chunk_rows = block_rows
    else:
        block_rows = rows                                    # full-extent block (tiny input)
        chunk_rows = rows
    grid = pl.cdiv(rows, block_rows)

    kernel = functools.partial(
        _pwl_kernel,
        num_breakpoints=num_breakpoints,
        chunk_rows=chunk_rows,
        block_rows=block_rows,
    )

    y_mat = pl.pallas_call(
        kernel,
        out_shape=jax.ShapeDtypeStruct((rows, LANES), work_dtype),
        grid_spec=pl.GridSpec(
            grid=(grid,),
            in_specs=[
                pl.BlockSpec(memory_space=pltpu.MemorySpace.SMEM),         # breakpoints t
                pl.BlockSpec(memory_space=pltpu.MemorySpace.SMEM),         # slope deltas
                pl.BlockSpec(memory_space=pltpu.MemorySpace.SMEM),         # [c0, s0]
                pl.BlockSpec((block_rows, LANES), lambda i: (i, 0)),       # x tile
            ],
            out_specs=pl.BlockSpec((block_rows, LANES), lambda i: (i, 0)),
        ),
        compiler_params=pltpu.CompilerParams(
            dimension_semantics=("parallel",)),
    )(t, delta, consts, x_mat)

    y = y_mat
    if n_pad != n:
        y = y.reshape(-1)[:n]
    out = y.reshape(orig_shape)
    if out.dtype != orig_dtype:
        out = out.astype(orig_dtype)
    return [out]


def pwl_reference(x, x_positions, slopes, biases):
    """Pure-jnp mirror of torchpwl's gather-based BaseSlopedPWL.forward + clip (for checking)."""
    t = jnp.sort(x_positions[0]).astype(jnp.float32)    # (K,)
    s = slopes[0].astype(jnp.float32)                    # (K+1,)
    bias = biases[0].astype(jnp.float32)
    xf = x.reshape(-1).astype(jnp.float32)
    # segment id = number of breakpoints <= x (equals torchpwl's argmin(+1) construction)
    b_id = jnp.sum(xf[:, None] >= t[None, :], axis=1)
    skips = t[1:] - t[:-1]
    cums = jnp.cumsum(skips * s[1:-1])
    betas = jnp.concatenate([jnp.stack([bias, bias]), bias + cums])   # (K+1,)
    bps = jnp.concatenate([t[:1], t])                                 # (K+1,)
    y = betas[b_id] + (xf - bps[b_id]) * s[b_id]
    return jnp.clip(y, 0.0, 1.0).reshape(x.shape)


if __name__ == "__main__":
    key = jax.random.PRNGKey(0)
    kx, kt, ks = jax.random.split(key, 3)

    B, C, H, W = 2, 4, 16, 16
    num_breakpoints = 100

    # Deterministic parameter init (shapes from torchpwl.PWL(num_channels=1, num_breakpoints=100)):
    #   x_positions: (1, 100) ~ N(0, 2^2)   (torchpwl default init std=2)
    #   slopes:      (1, 101) perturbed around 1 so the tone curve is non-trivial
    #   biases:      (1,)
    # TODO(synk): if torchpwl's learned x_positions are unsorted at inference, slopes would need
    # the matching argsort permutation for exact parameter-level fidelity; kernel and reference
    # here use the same (sorted-breakpoint, segment-ordered-slope) convention as torchpwl.
    x_positions = 2.0 * jax.random.normal(kt, (1, num_breakpoints), dtype=jnp.float32)
    slopes = 1.0 + 0.3 * jax.random.normal(ks, (1, num_breakpoints + 1), dtype=jnp.float32)
    biases = jnp.array([0.05], dtype=jnp.float32)

    x = jax.random.uniform(kx, (B, C, H, W), dtype=jnp.float32, minval=-0.5, maxval=1.5)

    out = pwl_tone_mapping(x, x_positions, slopes, biases)
    out = [jax.block_until_ready(o) for o in out]

    ref = pwl_reference(x, x_positions, slopes, biases)
    assert out[0].shape == x.shape and out[0].dtype == x.dtype
    np.testing.assert_allclose(np.asarray(out[0]), np.asarray(ref), atol=1e-3, rtol=1e-3)
    print("KERNEL_OK")
</pallas_src>

<mosaic_0001>
module attributes {stable_mosaic.version = 11 : i64} {
  func.func @_pwl_kernel(%arg0: i32, %arg1: memref<100xf32, #tpu.memory_space<smem>>, %arg2: memref<100xf32, #tpu.memory_space<smem>>, %arg3: memref<2xf32, #tpu.memory_space<smem>>, %arg4: memref<8x128xf32, #tpu.memory_space<vmem>>, %arg5: memref<8x128xf32, #tpu.memory_space<vmem>>) attributes {dimension_semantics = [#tpu.dimension_semantics<parallel>], iteration_bounds = array<i64: 2>, scalar_prefetch = 0 : i64, scratch_operands = 0 : i64, tpu.core_type = #tpu.core_type<tc>, window_params = [{transform_indices = @transform_0, window_bounds = array<i64: 100>}, {transform_indices = @transform_1, window_bounds = array<i64: 100>}, {transform_indices = @transform_2, window_bounds = array<i64: 2>}, {transform_indices = @transform_3, window_bounds = array<i64: 8, 128>}, {transform_indices = @transform_4, window_bounds = array<i64: 8, 128>}]} {
    %c0 = arith.constant 0 : index
    %0 = memref.load %arg3[%c0] : memref<2xf32, #tpu.memory_space<smem>>
    %c1 = arith.constant 1 : index
    %1 = memref.load %arg3[%c1] : memref<2xf32, #tpu.memory_space<smem>>
    %c0_0 = arith.constant 0 : index
    %2 = memref.load %arg1[%c0_0] : memref<100xf32, #tpu.memory_space<smem>>
    %c1_1 = arith.constant 1 : index
    %3 = memref.load %arg1[%c1_1] : memref<100xf32, #tpu.memory_space<smem>>
    %c2 = arith.constant 2 : index
    %4 = memref.load %arg1[%c2] : memref<100xf32, #tpu.memory_space<smem>>
    %c3 = arith.constant 3 : index
    %5 = memref.load %arg1[%c3] : memref<100xf32, #tpu.memory_space<smem>>
    %c4 = arith.constant 4 : index
    %6 = memref.load %arg1[%c4] : memref<100xf32, #tpu.memory_space<smem>>
    %c5 = arith.constant 5 : index
    %7 = memref.load %arg1[%c5] : memref<100xf32, #tpu.memory_space<smem>>
    %c6 = arith.constant 6 : index
    %8 = memref.load %arg1[%c6] : memref<100xf32, #tpu.memory_space<smem>>
    %c7 = arith.constant 7 : index
    %9 = memref.load %arg1[%c7] : memref<100xf32, #tpu.memory_space<smem>>
    %c8 = arith.constant 8 : index
    %10 = memref.load %arg1[%c8] : memref<100xf32, #tpu.memory_space<smem>>
    %c9 = arith.constant 9 : index
    %11 = memref.load %arg1[%c9] : memref<100xf32, #tpu.memory_space<smem>>
    %c10 = arith.constant 10 : index
    %12 = memref.load %arg1[%c10] : memref<100xf32, #tpu.memory_space<smem>>
    %c11 = arith.constant 11 : index
    %13 = memref.load %arg1[%c11] : memref<100xf32, #tpu.memory_space<smem>>
    %c12 = arith.constant 12 : index
    %14 = memref.load %arg1[%c12] : memref<100xf32, #tpu.memory_space<smem>>
    %c13 = arith.constant 13 : index
    %15 = memref.load %arg1[%c13] : memref<100xf32, #tpu.memory_space<smem>>
    %c14 = arith.constant 14 : index
    %16 = memref.load %arg1[%c14] : memref<100xf32, #tpu.memory_space<smem>>
    %c15 = arith.constant 15 : index
    %17 = memref.load %arg1[%c15] : memref<100xf32, #tpu.memory_space<smem>>
    %c16 = arith.constant 16 : index
    %18 = memref.load %arg1[%c16] : memref<100xf32, #tpu.memory_space<smem>>
    %c17 = arith.constant 17 : index
    %19 = memref.load %arg1[%c17] : memref<100xf32, #tpu.memory_space<smem>>
    %c18 = arith.constant 18 : index
    %20 = memref.load %arg1[%c18] : memref<100xf32, #tpu.memory_space<smem>>
    %c19 = arith.constant 19 : index
    %21 = memref.load %arg1[%c19] : memref<100xf32, #tpu.memory_space<smem>>
    %c20 = arith.constant 20 : index
    %22 = memref.load %arg1[%c20] : memref<100xf32, #tpu.memory_space<smem>>
    %c21 = arith.constant 21 : index
    %23 = memref.load %arg1[%c21] : memref<100xf32, #tpu.memory_space<smem>>
    %c22 = arith.constant 22 : index
    %24 = memref.load %arg1[%c22] : memref<100xf32, #tpu.memory_space<smem>>
    %c23 = arith.constant 23 : index
    %25 = memref.load %arg1[%c23] : memref<100xf32, #tpu.memory_space<smem>>
    %c24 = arith.constant 24 : index
    %26 = memref.load %arg1[%c24] : memref<100xf32, #tpu.memory_space<smem>>
    %c25 = arith.constant 25 : index
    %27 = memref.load %arg1[%c25] : memref<100xf32, #tpu.memory_space<smem>>
    %c26 = arith.constant 26 : index
    %28 = memref.load %arg1[%c26] : memref<100xf32, #tpu.memory_space<smem>>
    %c27 = arith.constant 27 : index
    %29 = memref.load %arg1[%c27] : memref<100xf32, #tpu.memory_space<smem>>
    %c28 = arith.constant 28 : index
    %30 = memref.load %arg1[%c28] : memref<100xf32, #tpu.memory_space<smem>>
    %c29 = arith.constant 29 : index
    %31 = memref.load %arg1[%c29] : memref<100xf32, #tpu.memory_space<smem>>
    %c30 = arith.constant 30 : index
    %32 = memref.load %arg1[%c30] : memref<100xf32, #tpu.memory_space<smem>>
    %c31 = arith.constant 31 : index
    %33 = memref.load %arg1[%c31] : memref<100xf32, #tpu.memory_space<smem>>
    %c32 = arith.constant 32 : index
    %34 = memref.load %arg1[%c32] : memref<100xf32, #tpu.memory_space<smem>>
    %c33 = arith.constant 33 : index
    %35 = memref.load %arg1[%c33] : memref<100xf32, #tpu.memory_space<smem>>
    %c34 = arith.constant 34 : index
    %36 = memref.load %arg1[%c34] : memref<100xf32, #tpu.memory_space<smem>>
    %c35 = arith.constant 35 : index
    %37 = memref.load %arg1[%c35] : memref<100xf32, #tpu.memory_space<smem>>
    %c36 = arith.constant 36 : index
    %38 = memref.load %arg1[%c36] : memref<100xf32, #tpu.memory_space<smem>>
    %c37 = arith.constant 37 : index
    %39 = memref.load %arg1[%c37] : memref<100xf32, #tpu.memory_space<smem>>
    %c38 = arith.constant 38 : index
    %40 = memref.load %arg1[%c38] : memref<100xf32, #tpu.memory_space<smem>>
    %c39 = arith.constant 39 : index
    %41 = memref.load %arg1[%c39] : memref<100xf32, #tpu.memory_space<smem>>
    %c40 = arith.constant 40 : index
    %42 = memref.load %arg1[%c40] : memref<100xf32, #tpu.memory_space<smem>>
    %c41 = arith.constant 41 : index
    %43 = memref.load %arg1[%c41] : memref<100xf32, #tpu.memory_space<smem>>
    %c42 = arith.constant 42 : index
    %44 = memref.load %arg1[%c42] : memref<100xf32, #tpu.memory_space<smem>>
    %c43 = arith.constant 43 : index
    %45 = memref.load %arg1[%c43] : memref<100xf32, #tpu.memory_space<smem>>
    %c44 = arith.constant 44 : index
    %46 = memref.load %arg1[%c44] : memref<100xf32, #tpu.memory_space<smem>>
    %c45 = arith.constant 45 : index
    %47 = memref.load %arg1[%c45] : memref<100xf32, #tpu.memory_space<smem>>
    %c46 = arith.constant 46 : index
    %48 = memref.load %arg1[%c46] : memref<100xf32, #tpu.memory_space<smem>>
    %c47 = arith.constant 47 : index
    %49 = memref.load %arg1[%c47] : memref<100xf32, #tpu.memory_space<smem>>
    %c48 = arith.constant 48 : index
    %50 = memref.load %arg1[%c48] : memref<100xf32, #tpu.memory_space<smem>>
    %c49 = arith.constant 49 : index
    %51 = memref.load %arg1[%c49] : memref<100xf32, #tpu.memory_space<smem>>
    %c50 = arith.constant 50 : index
    %52 = memref.load %arg1[%c50] : memref<100xf32, #tpu.memory_space<smem>>
    %c51 = arith.constant 51 : index
    %53 = memref.load %arg1[%c51] : memref<100xf32, #tpu.memory_space<smem>>
    %c52 = arith.constant 52 : index
    %54 = memref.load %arg1[%c52] : memref<100xf32, #tpu.memory_space<smem>>
    %c53 = arith.constant 53 : index
    %55 = memref.load %arg1[%c53] : memref<100xf32, #tpu.memory_space<smem>>
    %c54 = arith.constant 54 : index
    %56 = memref.load %arg1[%c54] : memref<100xf32, #tpu.memory_space<smem>>
    %c55 = arith.constant 55 : index
    %57 = memref.load %arg1[%c55] : memref<100xf32, #tpu.memory_space<smem>>
    %c56 = arith.constant 56 : index
    %58 = memref.load %arg1[%c56] : memref<100xf32, #tpu.memory_space<smem>>
    %c57 = arith.constant 57 : index
    %59 = memref.load %arg1[%c57] : memref<100xf32, #tpu.memory_space<smem>>
    %c58 = arith.constant 58 : index
    %60 = memref.load %arg1[%c58] : memref<100xf32, #tpu.memory_space<smem>>
    %c59 = arith.constant 59 : index
    %61 = memref.load %arg1[%c59] : memref<100xf32, #tpu.memory_space<smem>>
    %c60 = arith.constant 60 : index
    %62 = memref.load %arg1[%c60] : memref<100xf32, #tpu.memory_space<smem>>
    %c61 = arith.constant 61 : index
    %63 = memref.load %arg1[%c61] : memref<100xf32, #tpu.memory_space<smem>>
    %c62 = arith.constant 62 : index
    %64 = memref.load %arg1[%c62] : memref<100xf32, #tpu.memory_space<smem>>
    %c63 = arith.constant 63 : index
    %65 = memref.load %arg1[%c63] : memref<100xf32, #tpu.memory_space<smem>>
    %c64 = arith.constant 64 : index
    %66 = memref.load %arg1[%c64] : memref<100xf32, #tpu.memory_space<smem>>
    %c65 = arith.constant 65 : index
    %67 = memref.load %arg1[%c65] : memref<100xf32, #tpu.memory_space<smem>>
    %c66 = arith.constant 66 : index
    %68 = memref.load %arg1[%c66] : memref<100xf32, #tpu.memory_space<smem>>
    %c67 = arith.constant 67 : index
    %69 = memref.load %arg1[%c67] : memref<100xf32, #tpu.memory_space<smem>>
    %c68 = arith.constant 68 : index
    %70 = memref.load %arg1[%c68] : memref<100xf32, #tpu.memory_space<smem>>
    %c69 = arith.constant 69 : index
    %71 = memref.load %arg1[%c69] : memref<100xf32, #tpu.memory_space<smem>>
    %c70 = arith.constant 70 : index
    %72 = memref.load %arg1[%c70] : memref<100xf32, #tpu.memory_space<smem>>
    %c71 = arith.constant 71 : index
    %73 = memref.load %arg1[%c71] : memref<100xf32, #tpu.memory_space<smem>>
    %c72 = arith.constant 72 : index
    %74 = memref.load %arg1[%c72] : memref<100xf32, #tpu.memory_space<smem>>
    %c73 = arith.constant 73 : index
    %75 = memref.load %arg1[%c73] : memref<100xf32, #tpu.memory_space<smem>>
    %c74 = arith.constant 74 : index
    %76 = memref.load %arg1[%c74] : memref<100xf32, #tpu.memory_space<smem>>
    %c75 = arith.constant 75 : index
    %77 = memref.load %arg1[%c75] : memref<100xf32, #tpu.memory_space<smem>>
    %c76 = arith.constant 76 : index
    %78 = memref.load %arg1[%c76] : memref<100xf32, #tpu.memory_space<smem>>
    %c77 = arith.constant 77 : index
    %79 = memref.load %arg1[%c77] : memref<100xf32, #tpu.memory_space<smem>>
    %c78 = arith.constant 78 : index
    %80 = memref.load %arg1[%c78] : memref<100xf32, #tpu.memory_space<smem>>
    %c79 = arith.constant 79 : index
    %81 = memref.load %arg1[%c79] : memref<100xf32, #tpu.memory_space<smem>>
    %c80 = arith.constant 80 : index
    %82 = memref.load %arg1[%c80] : memref<100xf32, #tpu.memory_space<smem>>
    %c81 = arith.constant 81 : index
    %83 = memref.load %arg1[%c81] : memref<100xf32, #tpu.memory_space<smem>>
    %c82 = arith.constant 82 : index
    %84 = memref.load %arg1[%c82] : memref<100xf32, #tpu.memory_space<smem>>
    %c83 = arith.constant 83 : index
    %85 = memref.load %arg1[%c83] : memref<100xf32, #tpu.memory_space<smem>>
    %c84 = arith.constant 84 : index
    %86 = memref.load %arg1[%c84] : memref<100xf32, #tpu.memory_space<smem>>
    %c85 = arith.constant 85 : index
    %87 = memref.load %arg1[%c85] : memref<100xf32, #tpu.memory_space<smem>>
    %c86 = arith.constant 86 : index
    %88 = memref.load %arg1[%c86] : memref<100xf32, #tpu.memory_space<smem>>
    %c87 = arith.constant 87 : index
    %89 = memref.load %arg1[%c87] : memref<100xf32, #tpu.memory_space<smem>>
    %c88 = arith.constant 88 : index
    %90 = memref.load %arg1[%c88] : memref<100xf32, #tpu.memory_space<smem>>
    %c89 = arith.constant 89 : index
    %91 = memref.load %arg1[%c89] : memref<100xf32, #tpu.memory_space<smem>>
    %c90 = arith.constant 90 : index
    %92 = memref.load %arg1[%c90] : memref<100xf32, #tpu.memory_space<smem>>
    %c91 = arith.constant 91 : index
    %93 = memref.load %arg1[%c91] : memref<100xf32, #tpu.memory_space<smem>>
    %c92 = arith.constant 92 : index
    %94 = memref.load %arg1[%c92] : memref<100xf32, #tpu.memory_space<smem>>
    %c93 = arith.constant 93 : index
    %95 = memref.load %arg1[%c93] : memref<100xf32, #tpu.memory_space<smem>>
    %c94 = arith.constant 94 : index
    %96 = memref.load %arg1[%c94] : memref<100xf32, #tpu.memory_space<smem>>
    %c95 = arith.constant 95 : index
    %97 = memref.load %arg1[%c95] : memref<100xf32, #tpu.memory_space<smem>>
    %c96 = arith.constant 96 : index
    %98 = memref.load %arg1[%c96] : memref<100xf32, #tpu.memory_space<smem>>
    %c97 = arith.constant 97 : index
    %99 = memref.load %arg1[%c97] : memref<100xf32, #tpu.memory_space<smem>>
    %c98 = arith.constant 98 : index
    %100 = memref.load %arg1[%c98] : memref<100xf32, #tpu.memory_space<smem>>
    %c99 = arith.constant 99 : index
    %101 = memref.load %arg1[%c99] : memref<100xf32, #tpu.memory_space<smem>>
    %c0_2 = arith.constant 0 : index
    %102 = memref.load %arg2[%c0_2] : memref<100xf32, #tpu.memory_space<smem>>
    %c1_3 = arith.constant 1 : index
    %103 = memref.load %arg2[%c1_3] : memref<100xf32, #tpu.memory_space<smem>>
    %c2_4 = arith.constant 2 : index
    %104 = memref.load %arg2[%c2_4] : memref<100xf32, #tpu.memory_space<smem>>
    %c3_5 = arith.constant 3 : index
    %105 = memref.load %arg2[%c3_5] : memref<100xf32, #tpu.memory_space<smem>>
    %c4_6 = arith.constant 4 : index
    %106 = memref.load %arg2[%c4_6] : memref<100xf32, #tpu.memory_space<smem>>
    %c5_7 = arith.constant 5 : index
    %107 = memref.load %arg2[%c5_7] : memref<100xf32, #tpu.memory_space<smem>>
    %c6_8 = arith.constant 6 : index
    %108 = memref.load %arg2[%c6_8] : memref<100xf32, #tpu.memory_space<smem>>
    %c7_9 = arith.constant 7 : index
    %109 = memref.load %arg2[%c7_9] : memref<100xf32, #tpu.memory_space<smem>>
    %c8_10 = arith.constant 8 : index
    %110 = memref.load %arg2[%c8_10] : memref<100xf32, #tpu.memory_space<smem>>
    %c9_11 = arith.constant 9 : index
    %111 = memref.load %arg2[%c9_11] : memref<100xf32, #tpu.memory_space<smem>>
    %c10_12 = arith.constant 10 : index
    %112 = memref.load %arg2[%c10_12] : memref<100xf32, #tpu.memory_space<smem>>
    %c11_13 = arith.constant 11 : index
    %113 = memref.load %arg2[%c11_13] : memref<100xf32, #tpu.memory_space<smem>>
    %c12_14 = arith.constant 12 : index
    %114 = memref.load %arg2[%c12_14] : memref<100xf32, #tpu.memory_space<smem>>
    %c13_15 = arith.constant 13 : index
    %115 = memref.load %arg2[%c13_15] : memref<100xf32, #tpu.memory_space<smem>>
    %c14_16 = arith.constant 14 : index
    %116 = memref.load %arg2[%c14_16] : memref<100xf32, #tpu.memory_space<smem>>
    %c15_17 = arith.constant 15 : index
    %117 = memref.load %arg2[%c15_17] : memref<100xf32, #tpu.memory_space<smem>>
    %c16_18 = arith.constant 16 : index
    %118 = memref.load %arg2[%c16_18] : memref<100xf32, #tpu.memory_space<smem>>
    %c17_19 = arith.constant 17 : index
    %119 = memref.load %arg2[%c17_19] : memref<100xf32, #tpu.memory_space<smem>>
    %c18_20 = arith.constant 18 : index
    %120 = memref.load %arg2[%c18_20] : memref<100xf32, #tpu.memory_space<smem>>
    %c19_21 = arith.constant 19 : index
    %121 = memref.load %arg2[%c19_21] : memref<100xf32, #tpu.memory_space<smem>>
    %c20_22 = arith.constant 20 : index
    %122 = memref.load %arg2[%c20_22] : memref<100xf32, #tpu.memory_space<smem>>
    %c21_23 = arith.constant 21 : index
    %123 = memref.load %arg2[%c21_23] : memref<100xf32, #tpu.memory_space<smem>>
    %c22_24 = arith.constant 22 : index
    %124 = memref.load %arg2[%c22_24] : memref<100xf32, #tpu.memory_space<smem>>
    %c23_25 = arith.constant 23 : index
    %125 = memref.load %arg2[%c23_25] : memref<100xf32, #tpu.memory_space<smem>>
    %c24_26 = arith.constant 24 : index
    %126 = memref.load %arg2[%c24_26] : memref<100xf32, #tpu.memory_space<smem>>
    %c25_27 = arith.constant 25 : index
    %127 = memref.load %arg2[%c25_27] : memref<100xf32, #tpu.memory_space<smem>>
    %c26_28 = arith.constant 26 : index
    %128 = memref.load %arg2[%c26_28] : memref<100xf32, #tpu.memory_space<smem>>
    %c27_29 = arith.constant 27 : index
    %129 = memref.load %arg2[%c27_29] : memref<100xf32, #tpu.memory_space<smem>>
    %c28_30 = arith.constant 28 : index
    %130 = memref.load %arg2[%c28_30] : memref<100xf32, #tpu.memory_space<smem>>
    %c29_31 = arith.constant 29 : index
    %131 = memref.load %arg2[%c29_31] : memref<100xf32, #tpu.memory_space<smem>>
    %c30_32 = arith.constant 30 : index
    %132 = memref.load %arg2[%c30_32] : memref<100xf32, #tpu.memory_space<smem>>
    %c31_33 = arith.constant 31 : index
    %133 = memref.load %arg2[%c31_33] : memref<100xf32, #tpu.memory_space<smem>>
    %c32_34 = arith.constant 32 : index
    %134 = memref.load %arg2[%c32_34] : memref<100xf32, #tpu.memory_space<smem>>
    %c33_35 = arith.constant 33 : index
    %135 = memref.load %arg2[%c33_35] : memref<100xf32, #tpu.memory_space<smem>>
    %c34_36 = arith.constant 34 : index
    %136 = memref.load %arg2[%c34_36] : memref<100xf32, #tpu.memory_space<smem>>
    %c35_37 = arith.constant 35 : index
    %137 = memref.load %arg2[%c35_37] : memref<100xf32, #tpu.memory_space<smem>>
    %c36_38 = arith.constant 36 : index
    %138 = memref.load %arg2[%c36_38] : memref<100xf32, #tpu.memory_space<smem>>
    %c37_39 = arith.constant 37 : index
    %139 = memref.load %arg2[%c37_39] : memref<100xf32, #tpu.memory_space<smem>>
    %c38_40 = arith.constant 38 : index
    %140 = memref.load %arg2[%c38_40] : memref<100xf32, #tpu.memory_space<smem>>
    %c39_41 = arith.constant 39 : index
    %141 = memref.load %arg2[%c39_41] : memref<100xf32, #tpu.memory_space<smem>>
    %c40_42 = arith.constant 40 : index
    %142 = memref.load %arg2[%c40_42] : memref<100xf32, #tpu.memory_space<smem>>
    %c41_43 = arith.constant 41 : index
    %143 = memref.load %arg2[%c41_43] : memref<100xf32, #tpu.memory_space<smem>>
    %c42_44 = arith.constant 42 : index
    %144 = memref.load %arg2[%c42_44] : memref<100xf32, #tpu.memory_space<smem>>
    %c43_45 = arith.constant 43 : index
    %145 = memref.load %arg2[%c43_45] : memref<100xf32, #tpu.memory_space<smem>>
    %c44_46 = arith.constant 44 : index
    %146 = memref.load %arg2[%c44_46] : memref<100xf32, #tpu.memory_space<smem>>
    %c45_47 = arith.constant 45 : index
    %147 = memref.load %arg2[%c45_47] : memref<100xf32, #tpu.memory_space<smem>>
    %c46_48 = arith.constant 46 : index
    %148 = memref.load %arg2[%c46_48] : memref<100xf32, #tpu.memory_space<smem>>
    %c47_49 = arith.constant 47 : index
    %149 = memref.load %arg2[%c47_49] : memref<100xf32, #tpu.memory_space<smem>>
    %c48_50 = arith.constant 48 : index
    %150 = memref.load %arg2[%c48_50] : memref<100xf32, #tpu.memory_space<smem>>
    %c49_51 = arith.constant 49 : index
    %151 = memref.load %arg2[%c49_51] : memref<100xf32, #tpu.memory_space<smem>>
    %c50_52 = arith.constant 50 : index
    %152 = memref.load %arg2[%c50_52] : memref<100xf32, #tpu.memory_space<smem>>
    %c51_53 = arith.constant 51 : index
    %153 = memref.load %arg2[%c51_53] : memref<100xf32, #tpu.memory_space<smem>>
    %c52_54 = arith.constant 52 : index
    %154 = memref.load %arg2[%c52_54] : memref<100xf32, #tpu.memory_space<smem>>
    %c53_55 = arith.constant 53 : index
    %155 = memref.load %arg2[%c53_55] : memref<100xf32, #tpu.memory_space<smem>>
    %c54_56 = arith.constant 54 : index
    %156 = memref.load %arg2[%c54_56] : memref<100xf32, #tpu.memory_space<smem>>
    %c55_57 = arith.constant 55 : index
    %157 = memref.load %arg2[%c55_57] : memref<100xf32, #tpu.memory_space<smem>>
    %c56_58 = arith.constant 56 : index
    %158 = memref.load %arg2[%c56_58] : memref<100xf32, #tpu.memory_space<smem>>
    %c57_59 = arith.constant 57 : index
    %159 = memref.load %arg2[%c57_59] : memref<100xf32, #tpu.memory_space<smem>>
    %c58_60 = arith.constant 58 : index
    %160 = memref.load %arg2[%c58_60] : memref<100xf32, #tpu.memory_space<smem>>
    %c59_61 = arith.constant 59 : index
    %161 = memref.load %arg2[%c59_61] : memref<100xf32, #tpu.memory_space<smem>>
    %c60_62 = arith.constant 60 : index
    %162 = memref.load %arg2[%c60_62] : memref<100xf32, #tpu.memory_space<smem>>
    %c61_63 = arith.constant 61 : index
    %163 = memref.load %arg2[%c61_63] : memref<100xf32, #tpu.memory_space<smem>>
    %c62_64 = arith.constant 62 : index
    %164 = memref.load %arg2[%c62_64] : memref<100xf32, #tpu.memory_space<smem>>
    %c63_65 = arith.constant 63 : index
    %165 = memref.load %arg2[%c63_65] : memref<100xf32, #tpu.memory_space<smem>>
    %c64_66 = arith.constant 64 : index
    %166 = memref.load %arg2[%c64_66] : memref<100xf32, #tpu.memory_space<smem>>
    %c65_67 = arith.constant 65 : index
    %167 = memref.load %arg2[%c65_67] : memref<100xf32, #tpu.memory_space<smem>>
    %c66_68 = arith.constant 66 : index
    %168 = memref.load %arg2[%c66_68] : memref<100xf32, #tpu.memory_space<smem>>
    %c67_69 = arith.constant 67 : index
    %169 = memref.load %arg2[%c67_69] : memref<100xf32, #tpu.memory_space<smem>>
    %c68_70 = arith.constant 68 : index
    %170 = memref.load %arg2[%c68_70] : memref<100xf32, #tpu.memory_space<smem>>
    %c69_71 = arith.constant 69 : index
    %171 = memref.load %arg2[%c69_71] : memref<100xf32, #tpu.memory_space<smem>>
    %c70_72 = arith.constant 70 : index
    %172 = memref.load %arg2[%c70_72] : memref<100xf32, #tpu.memory_space<smem>>
    %c71_73 = arith.constant 71 : index
    %173 = memref.load %arg2[%c71_73] : memref<100xf32, #tpu.memory_space<smem>>
    %c72_74 = arith.constant 72 : index
    %174 = memref.load %arg2[%c72_74] : memref<100xf32, #tpu.memory_space<smem>>
    %c73_75 = arith.constant 73 : index
    %175 = memref.load %arg2[%c73_75] : memref<100xf32, #tpu.memory_space<smem>>
    %c74_76 = arith.constant 74 : index
    %176 = memref.load %arg2[%c74_76] : memref<100xf32, #tpu.memory_space<smem>>
    %c75_77 = arith.constant 75 : index
    %177 = memref.load %arg2[%c75_77] : memref<100xf32, #tpu.memory_space<smem>>
    %c76_78 = arith.constant 76 : index
    %178 = memref.load %arg2[%c76_78] : memref<100xf32, #tpu.memory_space<smem>>
    %c77_79 = arith.constant 77 : index
    %179 = memref.load %arg2[%c77_79] : memref<100xf32, #tpu.memory_space<smem>>
    %c78_80 = arith.constant 78 : index
    %180 = memref.load %arg2[%c78_80] : memref<100xf32, #tpu.memory_space<smem>>
    %c79_81 = arith.constant 79 : index
    %181 = memref.load %arg2[%c79_81] : memref<100xf32, #tpu.memory_space<smem>>
    %c80_82 = arith.constant 80 : index
    %182 = memref.load %arg2[%c80_82] : memref<100xf32, #tpu.memory_space<smem>>
    %c81_83 = arith.constant 81 : index
    %183 = memref.load %arg2[%c81_83] : memref<100xf32, #tpu.memory_space<smem>>
    %c82_84 = arith.constant 82 : index
    %184 = memref.load %arg2[%c82_84] : memref<100xf32, #tpu.memory_space<smem>>
    %c83_85 = arith.constant 83 : index
    %185 = memref.load %arg2[%c83_85] : memref<100xf32, #tpu.memory_space<smem>>
    %c84_86 = arith.constant 84 : index
    %186 = memref.load %arg2[%c84_86] : memref<100xf32, #tpu.memory_space<smem>>
    %c85_87 = arith.constant 85 : index
    %187 = memref.load %arg2[%c85_87] : memref<100xf32, #tpu.memory_space<smem>>
    %c86_88 = arith.constant 86 : index
    %188 = memref.load %arg2[%c86_88] : memref<100xf32, #tpu.memory_space<smem>>
    %c87_89 = arith.constant 87 : index
    %189 = memref.load %arg2[%c87_89] : memref<100xf32, #tpu.memory_space<smem>>
    %c88_90 = arith.constant 88 : index
    %190 = memref.load %arg2[%c88_90] : memref<100xf32, #tpu.memory_space<smem>>
    %c89_91 = arith.constant 89 : index
    %191 = memref.load %arg2[%c89_91] : memref<100xf32, #tpu.memory_space<smem>>
    %c90_92 = arith.constant 90 : index
    %192 = memref.load %arg2[%c90_92] : memref<100xf32, #tpu.memory_space<smem>>
    %c91_93 = arith.constant 91 : index
    %193 = memref.load %arg2[%c91_93] : memref<100xf32, #tpu.memory_space<smem>>
    %c92_94 = arith.constant 92 : index
    %194 = memref.load %arg2[%c92_94] : memref<100xf32, #tpu.memory_space<smem>>
    %c93_95 = arith.constant 93 : index
    %195 = memref.load %arg2[%c93_95] : memref<100xf32, #tpu.memory_space<smem>>
    %c94_96 = arith.constant 94 : index
    %196 = memref.load %arg2[%c94_96] : memref<100xf32, #tpu.memory_space<smem>>
    %c95_97 = arith.constant 95 : index
    %197 = memref.load %arg2[%c95_97] : memref<100xf32, #tpu.memory_space<smem>>
    %c96_98 = arith.constant 96 : index
    %198 = memref.load %arg2[%c96_98] : memref<100xf32, #tpu.memory_space<smem>>
    %c97_99 = arith.constant 97 : index
    %199 = memref.load %arg2[%c97_99] : memref<100xf32, #tpu.memory_space<smem>>
    %c98_100 = arith.constant 98 : index
    %200 = memref.load %arg2[%c98_100] : memref<100xf32, #tpu.memory_space<smem>>
    %c99_101 = arith.constant 99 : index
    %201 = memref.load %arg2[%c99_101] : memref<100xf32, #tpu.memory_space<smem>>
    %c0_i32 = arith.constant 0 : i32
    %c8_i32 = arith.constant 8 : i32
    %202 = arith.muli %c0_i32, %c8_i32 : i32
    %203 = tpu.assume_multiple %202, 8 : i32
    %204 = arith.index_cast %203 : i32 to index
    %c0_102 = arith.constant 0 : index
    %205 = vector.load %arg4[%204, %c0_102] : memref<8x128xf32, #tpu.memory_space<vmem>>, vector<8x128xf32>
    %206 = vector.broadcast %1 : f32 to vector<8x128xf32>
    %207 = arith.mulf %206, %205 : vector<8x128xf32>
    %208 = vector.broadcast %0 : f32 to vector<8x128xf32>
    %209 = arith.addf %208, %207 : vector<8x128xf32>
    %cst = arith.constant 0.000000e+00 : f32
    %210 = vector.broadcast %cst : f32 to vector<8x128xf32>
    %211 = vector.broadcast %2 : f32 to vector<8x128xf32>
    %212 = arith.maximumf %205, %211 : vector<8x128xf32>
    %213 = vector.broadcast %102 : f32 to vector<8x128xf32>
    %214 = arith.mulf %213, %212 : vector<8x128xf32>
    %215 = arith.addf %209, %214 : vector<8x128xf32>
    %216 = vector.broadcast %3 : f32 to vector<8x128xf32>
    %217 = arith.maximumf %205, %216 : vector<8x128xf32>
    %218 = vector.broadcast %103 : f32 to vector<8x128xf32>
    %219 = arith.mulf %218, %217 : vector<8x128xf32>
    %220 = arith.addf %210, %219 : vector<8x128xf32>
    %221 = vector.broadcast %4 : f32 to vector<8x128xf32>
    %222 = arith.maximumf %205, %221 : vector<8x128xf32>
    %223 = vector.broadcast %104 : f32 to vector<8x128xf32>
    %224 = arith.mulf %223, %222 : vector<8x128xf32>
    %225 = arith.addf %215, %224 : vector<8x128xf32>
    %226 = vector.broadcast %5 : f32 to vector<8x128xf32>
    %227 = arith.maximumf %205, %226 : vector<8x128xf32>
    %228 = vector.broadcast %105 : f32 to vector<8x128xf32>
    %229 = arith.mulf %228, %227 : vector<8x128xf32>
    %230 = arith.addf %220, %229 : vector<8x128xf32>
    %231 = vector.broadcast %6 : f32 to vector<8x128xf32>
    %232 = arith.maximumf %205, %231 : vector<8x128xf32>
    %233 = vector.broadcast %106 : f32 to vector<8x128xf32>
    %234 = arith.mulf %233, %232 : vector<8x128xf32>
    %235 = arith.addf %225, %234 : vector<8x128xf32>
    %236 = vector.broadcast %7 : f32 to vector<8x128xf32>
    %237 = arith.maximumf %205, %236 : vector<8x128xf32>
    %238 = vector.broadcast %107 : f32 to vector<8x128xf32>
    %239 = arith.mulf %238, %237 : vector<8x128xf32>
    %240 = arith.addf %230, %239 : vector<8x128xf32>
    %241 = vector.broadcast %8 : f32 to vector<8x128xf32>
    %242 = arith.maximumf %205, %241 : vector<8x128xf32>
    %243 = vector.broadcast %108 : f32 to vector<8x128xf32>
    %244 = arith.mulf %243, %242 : vector<8x128xf32>
    %245 = arith.addf %235, %244 : vector<8x128xf32>
    %246 = vector.broadcast %9 : f32 to vector<8x128xf32>
    %247 = arith.maximumf %205, %246 : vector<8x128xf32>
    %248 = vector.broadcast %109 : f32 to vector<8x128xf32>
    %249 = arith.mulf %248, %247 : vector<8x128xf32>
    %250 = arith.addf %240, %249 : vector<8x128xf32>
    %251 = vector.broadcast %10 : f32 to vector<8x128xf32>
    %252 = arith.maximumf %205, %251 : vector<8x128xf32>
    %253 = vector.broadcast %110 : f32 to vector<8x128xf32>
    %254 = arith.mulf %253, %252 : vector<8x128xf32>
    %255 = arith.addf %245, %254 : vector<8x128xf32>
    %256 = vector.broadcast %11 : f32 to vector<8x128xf32>
    %257 = arith.maximumf %205, %256 : vector<8x128xf32>
    %258 = vector.broadcast %111 : f32 to vector<8x128xf32>
    %259 = arith.mulf %258, %257 : vector<8x128xf32>
    %260 = arith.addf %250, %259 : vector<8x128xf32>
    %261 = vector.broadcast %12 : f32 to vector<8x128xf32>
    %262 = arith.maximumf %205, %261 : vector<8x128xf32>
    %263 = vector.broadcast %112 : f32 to vector<8x128xf32>
    %264 = arith.mulf %263, %262 : vector<8x128xf32>
    %265 = arith.addf %255, %264 : vector<8x128xf32>
    %266 = vector.broadcast %13 : f32 to vector<8x128xf32>
    %267 = arith.maximumf %205, %266 : vector<8x128xf32>
    %268 = vector.broadcast %113 : f32 to vector<8x128xf32>
    %269 = arith.mulf %268, %267 : vector<8x128xf32>
    %270 = arith.addf %260, %269 : vector<8x128xf32>
    %271 = vector.broadcast %14 : f32 to vector<8x128xf32>
    %272 = arith.maximumf %205, %271 : vector<8x128xf32>
    %273 = vector.broadcast %114 : f32 to vector<8x128xf32>
    %274 = arith.mulf %273, %272 : vector<8x128xf32>
    %275 = arith.addf %265, %274 : vector<8x128xf32>
    %276 = vector.broadcast %15 : f32 to vector<8x128xf32>
    %277 = arith.maximumf %205, %276 : vector<8x128xf32>
    %278 = vector.broadcast %115 : f32 to vector<8x128xf32>
    %279 = arith.mulf %278, %277 : vector<8x128xf32>
    %280 = arith.addf %270, %279 : vector<8x128xf32>
    %281 = vector.broadcast %16 : f32 to vector<8x128xf32>
    %282 = arith.maximumf %205, %281 : vector<8x128xf32>
    %283 = vector.broadcast %116 : f32 to vector<8x128xf32>
    %284 = arith.mulf %283, %282 : vector<8x128xf32>
    %285 = arith.addf %275, %284 : vector<8x128xf32>
    %286 = vector.broadcast %17 : f32 to vector<8x128xf32>
    %287 = arith.maximumf %205, %286 : vector<8x128xf32>
    %288 = vector.broadcast %117 : f32 to vector<8x128xf32>
    %289 = arith.mulf %288, %287 : vector<8x128xf32>
    %290 = arith.addf %280, %289 : vector<8x128xf32>
    %291 = vector.broadcast %18 : f32 to vector<8x128xf32>
    %292 = arith.maximumf %205, %291 : vector<8x128xf32>
    %293 = vector.broadcast %118 : f32 to vector<8x128xf32>
    %294 = arith.mulf %293, %292 : vector<8x128xf32>
    %295 = arith.addf %285, %294 : vector<8x128xf32>
    %296 = vector.broadcast %19 : f32 to vector<8x128xf32>
    %297 = arith.maximumf %205, %296 : vector<8x128xf32>
    %298 = vector.broadcast %119 : f32 to vector<8x128xf32>
    %299 = arith.mulf %298, %297 : vector<8x128xf32>
    %300 = arith.addf %290, %299 : vector<8x128xf32>
    %301 = vector.broadcast %20 : f32 to vector<8x128xf32>
    %302 = arith.maximumf %205, %301 : vector<8x128xf32>
    %303 = vector.broadcast %120 : f32 to vector<8x128xf32>
    %304 = arith.mulf %303, %302 : vector<8x128xf32>
    %305 = arith.addf %295, %304 : vector<8x128xf32>
    %306 = vector.broadcast %21 : f32 to vector<8x128xf32>
    %307 = arith.maximumf %205, %306 : vector<8x128xf32>
    %308 = vector.broadcast %121 : f32 to vector<8x128xf32>
    %309 = arith.mulf %308, %307 : vector<8x128xf32>
    %310 = arith.addf %300, %309 : vector<8x128xf32>
    %311 = vector.broadcast %22 : f32 to vector<8x128xf32>
    %312 = arith.maximumf %205, %311 : vector<8x128xf32>
    %313 = vector.broadcast %122 : f32 to vector<8x128xf32>
    %314 = arith.mulf %313, %312 : vector<8x128xf32>
    %315 = arith.addf %305, %314 : vector<8x128xf32>
    %316 = vector.broadcast %23 : f32 to vector<8x128xf32>
    %317 = arith.maximumf %205, %316 : vector<8x128xf32>
    %318 = vector.broadcast %123 : f32 to vector<8x128xf32>
    %319 = arith.mulf %318, %317 : vector<8x128xf32>
    %320 = arith.addf %310, %319 : vector<8x128xf32>
    %321 = vector.broadcast %24 : f32 to vector<8x128xf32>
    %322 = arith.maximumf %205, %321 : vector<8x128xf32>
    %323 = vector.broadcast %124 : f32 to vector<8x128xf32>
    %324 = arith.mulf %323, %322 : vector<8x128xf32>
    %325 = arith.addf %315, %324 : vector<8x128xf32>
    %326 = vector.broadcast %25 : f32 to vector<8x128xf32>
    %327 = arith.maximumf %205, %326 : vector<8x128xf32>
    %328 = vector.broadcast %125 : f32 to vector<8x128xf32>
    %329 = arith.mulf %328, %327 : vector<8x128xf32>
    %330 = arith.addf %320, %329 : vector<8x128xf32>
    %331 = vector.broadcast %26 : f32 to vector<8x128xf32>
    %332 = arith.maximumf %205, %331 : vector<8x128xf32>
    %333 = vector.broadcast %126 : f32 to vector<8x128xf32>
    %334 = arith.mulf %333, %332 : vector<8x128xf32>
    %335 = arith.addf %325, %334 : vector<8x128xf32>
    %336 = vector.broadcast %27 : f32 to vector<8x128xf32>
    %337 = arith.maximumf %205, %336 : vector<8x128xf32>
    %338 = vector.broadcast %127 : f32 to vector<8x128xf32>
    %339 = arith.mulf %338, %337 : vector<8x128xf32>
    %340 = arith.addf %330, %339 : vector<8x128xf32>
    %341 = vector.broadcast %28 : f32 to vector<8x128xf32>
    %342 = arith.maximumf %205, %341 : vector<8x128xf32>
    %343 = vector.broadcast %128 : f32 to vector<8x128xf32>
    %344 = arith.mulf %343, %342 : vector<8x128xf32>
    %345 = arith.addf %335, %344 : vector<8x128xf32>
    %346 = vector.broadcast %29 : f32 to vector<8x128xf32>
    %347 = arith.maximumf %205, %346 : vector<8x128xf32>
    %348 = vector.broadcast %129 : f32 to vector<8x128xf32>
    %349 = arith.mulf %348, %347 : vector<8x128xf32>
    %350 = arith.addf %340, %349 : vector<8x128xf32>
    %351 = vector.broadcast %30 : f32 to vector<8x128xf32>
    %352 = arith.maximumf %205, %351 : vector<8x128xf32>
    %353 = vector.broadcast %130 : f32 to vector<8x128xf32>
    %354 = arith.mulf %353, %352 : vector<8x128xf32>
    %355 = arith.addf %345, %354 : vector<8x128xf32>
    %356 = vector.broadcast %31 : f32 to vector<8x128xf32>
    %357 = arith.maximumf %205, %356 : vector<8x128xf32>
    %358 = vector.broadcast %131 : f32 to vector<8x128xf32>
    %359 = arith.mulf %358, %357 : vector<8x128xf32>
    %360 = arith.addf %350, %359 : vector<8x128xf32>
    %361 = vector.broadcast %32 : f32 to vector<8x128xf32>
    %362 = arith.maximumf %205, %361 : vector<8x128xf32>
    %363 = vector.broadcast %132 : f32 to vector<8x128xf32>
    %364 = arith.mulf %363, %362 : vector<8x128xf32>
    %365 = arith.addf %355, %364 : vector<8x128xf32>
    %366 = vector.broadcast %33 : f32 to vector<8x128xf32>
    %367 = arith.maximumf %205, %366 : vector<8x128xf32>
    %368 = vector.broadcast %133 : f32 to vector<8x128xf32>
    %369 = arith.mulf %368, %367 : vector<8x128xf32>
    %370 = arith.addf %360, %369 : vector<8x128xf32>
    %371 = vector.broadcast %34 : f32 to vector<8x128xf32>
    %372 = arith.maximumf %205, %371 : vector<8x128xf32>
    %373 = vector.broadcast %134 : f32 to vector<8x128xf32>
    %374 = arith.mulf %373, %372 : vector<8x128xf32>
    %375 = arith.addf %365, %374 : vector<8x128xf32>
    %376 = vector.broadcast %35 : f32 to vector<8x128xf32>
    %377 = arith.maximumf %205, %376 : vector<8x128xf32>
    %378 = vector.broadcast %135 : f32 to vector<8x128xf32>
    %379 = arith.mulf %378, %377 : vector<8x128xf32>
    %380 = arith.addf %370, %379 : vector<8x128xf32>
    %381 = vector.broadcast %36 : f32 to vector<8x128xf32>
    %382 = arith.maximumf %205, %381 : vector<8x128xf32>
    %383 = vector.broadcast %136 : f32 to vector<8x128xf32>
    %384 = arith.mulf %383, %382 : vector<8x128xf32>
    %385 = arith.addf %375, %384 : vector<8x128xf32>
    %386 = vector.broadcast %37 : f32 to vector<8x128xf32>
    %387 = arith.maximumf %205, %386 : vector<8x128xf32>
    %388 = vector.broadcast %137 : f32 to vector<8x128xf32>
    %389 = arith.mulf %388, %387 : vector<8x128xf32>
    %390 = arith.addf %380, %389 : vector<8x128xf32>
    %391 = vector.broadcast %38 : f32 to vector<8x128xf32>
    %392 = arith.maximumf %205, %391 : vector<8x128xf32>
    %393 = vector.broadcast %138 : f32 to vector<8x128xf32>
    %394 = arith.mulf %393, %392 : vector<8x128xf32>
    %395 = arith.addf %385, %394 : vector<8x128xf32>
    %396 = vector.broadcast %39 : f32 to vector<8x128xf32>
    %397 = arith.maximumf %205, %396 : vector<8x128xf32>
    %398 = vector.broadcast %139 : f32 to vector<8x128xf32>
    %399 = arith.mulf %398, %397 : vector<8x128xf32>
    %400 = arith.addf %390, %399 : vector<8x128xf32>
    %401 = vector.broadcast %40 : f32 to vector<8x128xf32>
    %402 = arith.maximumf %205, %401 : vector<8x128xf32>
    %403 = vector.broadcast %140 : f32 to vector<8x128xf32>
    %404 = arith.mulf %403, %402 : vector<8x128xf32>
    %405 = arith.addf %395, %404 : vector<8x128xf32>
    %406 = vector.broadcast %41 : f32 to vector<8x128xf32>
    %407 = arith.maximumf %205, %406 : vector<8x128xf32>
    %408 = vector.broadcast %141 : f32 to vector<8x128xf32>
    %409 = arith.mulf %408, %407 : vector<8x128xf32>
    %410 = arith.addf %400, %409 : vector<8x128xf32>
    %411 = vector.broadcast %42 : f32 to vector<8x128xf32>
    %412 = arith.maximumf %205, %411 : vector<8x128xf32>
    %413 = vector.broadcast %142 : f32 to vector<8x128xf32>
    %414 = arith.mulf %413, %412 : vector<8x128xf32>
    %415 = arith.addf %405, %414 : vector<8x128xf32>
    %416 = vector.broadcast %43 : f32 to vector<8x128xf32>
    %417 = arith.maximumf %205, %416 : vector<8x128xf32>
    %418 = vector.broadcast %143 : f32 to vector<8x128xf32>
    %419 = arith.mulf %418, %417 : vector<8x128xf32>
    %420 = arith.addf %410, %419 : vector<8x128xf32>
    %421 = vector.broadcast %44 : f32 to vector<8x128xf32>
    %422 = arith.maximumf %205, %421 : vector<8x128xf32>
    %423 = vector.broadcast %144 : f32 to vector<8x128xf32>
    %424 = arith.mulf %423, %422 : vector<8x128xf32>
    %425 = arith.addf %415, %424 : vector<8x128xf32>
    %426 = vector.broadcast %45 : f32 to vector<8x128xf32>
    %427 = arith.maximumf %205, %426 : vector<8x128xf32>
    %428 = vector.broadcast %145 : f32 to vector<8x128xf32>
    %429 = arith.mulf %428, %427 : vector<8x128xf32>
    %430 = arith.addf %420, %429 : vector<8x128xf32>
    %431 = vector.broadcast %46 : f32 to vector<8x128xf32>
    %432 = arith.maximumf %205, %431 : vector<8x128xf32>
    %433 = vector.broadcast %146 : f32 to vector<8x128xf32>
    %434 = arith.mulf %433, %432 : vector<8x128xf32>
    %435 = arith.addf %425, %434 : vector<8x128xf32>
    %436 = vector.broadcast %47 : f32 to vector<8x128xf32>
    %437 = arith.maximumf %205, %436 : vector<8x128xf32>
    %438 = vector.broadcast %147 : f32 to vector<8x128xf32>
    %439 = arith.mulf %438, %437 : vector<8x128xf32>
    %440 = arith.addf %430, %439 : vector<8x128xf32>
    %441 = vector.broadcast %48 : f32 to vector<8x128xf32>
    %442 = arith.maximumf %205, %441 : vector<8x128xf32>
    %443 = vector.broadcast %148 : f32 to vector<8x128xf32>
    %444 = arith.mulf %443, %442 : vector<8x128xf32>
    %445 = arith.addf %435, %444 : vector<8x128xf32>
    %446 = vector.broadcast %49 : f32 to vector<8x128xf32>
    %447 = arith.maximumf %205, %446 : vector<8x128xf32>
    %448 = vector.broadcast %149 : f32 to vector<8x128xf32>
    %449 = arith.mulf %448, %447 : vector<8x128xf32>
    %450 = arith.addf %440, %449 : vector<8x128xf32>
    %451 = vector.broadcast %50 : f32 to vector<8x128xf32>
    %452 = arith.maximumf %205, %451 : vector<8x128xf32>
    %453 = vector.broadcast %150 : f32 to vector<8x128xf32>
    %454 = arith.mulf %453, %452 : vector<8x128xf32>
    %455 = arith.addf %445, %454 : vector<8x128xf32>
    %456 = vector.broadcast %51 : f32 to vector<8x128xf32>
    %457 = arith.maximumf %205, %456 : vector<8x128xf32>
    %458 = vector.broadcast %151 : f32 to vector<8x128xf32>
    %459 = arith.mulf %458, %457 : vector<8x128xf32>
    %460 = arith.addf %450, %459 : vector<8x128xf32>
    %461 = vector.broadcast %52 : f32 to vector<8x128xf32>
    %462 = arith.maximumf %205, %461 : vector<8x128xf32>
    %463 = vector.broadcast %152 : f32 to vector<8x128xf32>
    %464 = arith.mulf %463, %462 : vector<8x128xf32>
    %465 = arith.addf %455, %464 : vector<8x128xf32>
    %466 = vector.broadcast %53 : f32 to vector<8x128xf32>
    %467 = arith.maximumf %205, %466 : vector<8x128xf32>
    %468 = vector.broadcast %153 : f32 to vector<8x128xf32>
    %469 = arith.mulf %468, %467 : vector<8x128xf32>
    %470 = arith.addf %460, %469 : vector<8x128xf32>
    %471 = vector.broadcast %54 : f32 to vector<8x128xf32>
    %472 = arith.maximumf %205, %471 : vector<8x128xf32>
    %473 = vector.broadcast %154 : f32 to vector<8x128xf32>
    %474 = arith.mulf %473, %472 : vector<8x128xf32>
    %475 = arith.addf %465, %474 : vector<8x128xf32>
    %476 = vector.broadcast %55 : f32 to vector<8x128xf32>
    %477 = arith.maximumf %205, %476 : vector<8x128xf32>
    %478 = vector.broadcast %155 : f32 to vector<8x128xf32>
    %479 = arith.mulf %478, %477 : vector<8x128xf32>
    %480 = arith.addf %470, %479 : vector<8x128xf32>
    %481 = vector.broadcast %56 : f32 to vector<8x128xf32>
    %482 = arith.maximumf %205, %481 : vector<8x128xf32>
    %483 = vector.broadcast %156 : f32 to vector<8x128xf32>
    %484 = arith.mulf %483, %482 : vector<8x128xf32>
    %485 = arith.addf %475, %484 : vector<8x128xf32>
    %486 = vector.broadcast %57 : f32 to vector<8x128xf32>
    %487 = arith.maximumf %205, %486 : vector<8x128xf32>
    %488 = vector.broadcast %157 : f32 to vector<8x128xf32>
    %489 = arith.mulf %488, %487 : vector<8x128xf32>
    %490 = arith.addf %480, %489 : vector<8x128xf32>
    %491 = vector.broadcast %58 : f32 to vector<8x128xf32>
    %492 = arith.maximumf %205, %491 : vector<8x128xf32>
    %493 = vector.broadcast %158 : f32 to vector<8x128xf32>
    %494 = arith.mulf %493, %492 : vector<8x128xf32>
    %495 = arith.addf %485, %494 : vector<8x128xf32>
    %496 = vector.broadcast %59 : f32 to vector<8x128xf32>
    %497 = arith.maximumf %205, %496 : vector<8x128xf32>
    %498 = vector.broadcast %159 : f32 to vector<8x128xf32>
    %499 = arith.mulf %498, %497 : vector<8x128xf32>
    %500 = arith.addf %490, %499 : vector<8x128xf32>
    %501 = vector.broadcast %60 : f32 to vector<8x128xf32>
    %502 = arith.maximumf %205, %501 : vector<8x128xf32>
    %503 = vector.broadcast %160 : f32 to vector<8x128xf32>
    %504 = arith.mulf %503, %502 : vector<8x128xf32>
    %505 = arith.addf %495, %504 : vector<8x128xf32>
    %506 = vector.broadcast %61 : f32 to vector<8x128xf32>
    %507 = arith.maximumf %205, %506 : vector<8x128xf32>
    %508 = vector.broadcast %161 : f32 to vector<8x128xf32>
    %509 = arith.mulf %508, %507 : vector<8x128xf32>
    %510 = arith.addf %500, %509 : vector<8x128xf32>
    %511 = vector.broadcast %62 : f32 to vector<8x128xf32>
    %512 = arith.maximumf %205, %511 : vector<8x128xf32>
    %513 = vector.broadcast %162 : f32 to vector<8x128xf32>
    %514 = arith.mulf %513, %512 : vector<8x128xf32>
    %515 = arith.addf %505, %514 : vector<8x128xf32>
    %516 = vector.broadcast %63 : f32 to vector<8x128xf32>
    %517 = arith.maximumf %205, %516 : vector<8x128xf32>
    %518 = vector.broadcast %163 : f32 to vector<8x128xf32>
    %519 = arith.mulf %518, %517 : vector<8x128xf32>
    %520 = arith.addf %510, %519 : vector<8x128xf32>
    %521 = vector.broadcast %64 : f32 to vector<8x128xf32>
    %522 = arith.maximumf %205, %521 : vector<8x128xf32>
    %523 = vector.broadcast %164 : f32 to vector<8x128xf32>
    %524 = arith.mulf %523, %522 : vector<8x128xf32>
    %525 = arith.addf %515, %524 : vector<8x128xf32>
    %526 = vector.broadcast %65 : f32 to vector<8x128xf32>
    %527 = arith.maximumf %205, %526 : vector<8x128xf32>
    %528 = vector.broadcast %165 : f32 to vector<8x128xf32>
    %529 = arith.mulf %528, %527 : vector<8x128xf32>
    %530 = arith.addf %520, %529 : vector<8x128xf32>
    %531 = vector.broadcast %66 : f32 to vector<8x128xf32>
    %532 = arith.maximumf %205, %531 : vector<8x128xf32>
    %533 = vector.broadcast %166 : f32 to vector<8x128xf32>
    %534 = arith.mulf %533, %532 : vector<8x128xf32>
    %535 = arith.addf %525, %534 : vector<8x128xf32>
    %536 = vector.broadcast %67 : f32 to vector<8x128xf32>
    %537 = arith.maximumf %205, %536 : vector<8x128xf32>
    %538 = vector.broadcast %167 : f32 to vector<8x128xf32>
    %539 = arith.mulf %538, %537 : vector<8x128xf32>
    %540 = arith.addf %530, %539 : vector<8x128xf32>
    %541 = vector.broadcast %68 : f32 to vector<8x128xf32>
    %542 = arith.maximumf %205, %541 : vector<8x128xf32>
    %543 = vector.broadcast %168 : f32 to vector<8x128xf32>
    %544 = arith.mulf %543, %542 : vector<8x128xf32>
    %545 = arith.addf %535, %544 : vector<8x128xf32>
    %546 = vector.broadcast %69 : f32 to vector<8x128xf32>
    %547 = arith.maximumf %205, %546 : vector<8x128xf32>
    %548 = vector.broadcast %169 : f32 to vector<8x128xf32>
    %549 = arith.mulf %548, %547 : vector<8x128xf32>
    %550 = arith.addf %540, %549 : vector<8x128xf32>
    %551 = vector.broadcast %70 : f32 to vector<8x128xf32>
    %552 = arith.maximumf %205, %551 : vector<8x128xf32>
    %553 = vector.broadcast %170 : f32 to vector<8x128xf32>
    %554 = arith.mulf %553, %552 : vector<8x128xf32>
    %555 = arith.addf %545, %554 : vector<8x128xf32>
    %556 = vector.broadcast %71 : f32 to vector<8x128xf32>
    %557 = arith.maximumf %205, %556 : vector<8x128xf32>
    %558 = vector.broadcast %171 : f32 to vector<8x128xf32>
    %559 = arith.mulf %558, %557 : vector<8x128xf32>
    %560 = arith.addf %550, %559 : vector<8x128xf32>
    %561 = vector.broadcast %72 : f32 to vector<8x128xf32>
    %562 = arith.maximumf %205, %561 : vector<8x128xf32>
    %563 = vector.broadcast %172 : f32 to vector<8x128xf32>
    %564 = arith.mulf %563, %562 : vector<8x128xf32>
    %565 = arith.addf %555, %564 : vector<8x128xf32>
    %566 = vector.broadcast %73 : f32 to vector<8x128xf32>
    %567 = arith.maximumf %205, %566 : vector<8x128xf32>
    %568 = vector.broadcast %173 : f32 to vector<8x128xf32>
    %569 = arith.mulf %568, %567 : vector<8x128xf32>
    %570 = arith.addf %560, %569 : vector<8x128xf32>
    %571 = vector.broadcast %74 : f32 to vector<8x128xf32>
    %572 = arith.maximumf %205, %571 : vector<8x128xf32>
    %573 = vector.broadcast %174 : f32 to vector<8x128xf32>
    %574 = arith.mulf %573, %572 : vector<8x128xf32>
    %575 = arith.addf %565, %574 : vector<8x128xf32>
    %576 = vector.broadcast %75 : f32 to vector<8x128xf32>
    %577 = arith.maximumf %205, %576 : vector<8x128xf32>
    %578 = vector.broadcast %175 : f32 to vector<8x128xf32>
    %579 = arith.mulf %578, %577 : vector<8x128xf32>
    %580 = arith.addf %570, %579 : vector<8x128xf32>
    %581 = vector.broadcast %76 : f32 to vector<8x128xf32>
    %582 = arith.maximumf %205, %581 : vector<8x128xf32>
    %583 = vector.broadcast %176 : f32 to vector<8x128xf32>
    %584 = arith.mulf %583, %582 : vector<8x128xf32>
    %585 = arith.addf %575, %584 : vector<8x128xf32>
    %586 = vector.broadcast %77 : f32 to vector<8x128xf32>
    %587 = arith.maximumf %205, %586 : vector<8x128xf32>
    %588 = vector.broadcast %177 : f32 to vector<8x128xf32>
    %589 = arith.mulf %588, %587 : vector<8x128xf32>
    %590 = arith.addf %580, %589 : vector<8x128xf32>
    %591 = vector.broadcast %78 : f32 to vector<8x128xf32>
    %592 = arith.maximumf %205, %591 : vector<8x128xf32>
    %593 = vector.broadcast %178 : f32 to vector<8x128xf32>
    %594 = arith.mulf %593, %592 : vector<8x128xf32>
    %595 = arith.addf %585, %594 : vector<8x128xf32>
    %596 = vector.broadcast %79 : f32 to vector<8x128xf32>
    %597 = arith.maximumf %205, %596 : vector<8x128xf32>
    %598 = vector.broadcast %179 : f32 to vector<8x128xf32>
    %599 = arith.mulf %598, %597 : vector<8x128xf32>
    %600 = arith.addf %590, %599 : vector<8x128xf32>
    %601 = vector.broadcast %80 : f32 to vector<8x128xf32>
    %602 = arith.maximumf %205, %601 : vector<8x128xf32>
    %603 = vector.broadcast %180 : f32 to vector<8x128xf32>
    %604 = arith.mulf %603, %602 : vector<8x128xf32>
    %605 = arith.addf %595, %604 : vector<8x128xf32>
    %606 = vector.broadcast %81 : f32 to vector<8x128xf32>
    %607 = arith.maximumf %205, %606 : vector<8x128xf32>
    %608 = vector.broadcast %181 : f32 to vector<8x128xf32>
    %609 = arith.mulf %608, %607 : vector<8x128xf32>
    %610 = arith.addf %600, %609 : vector<8x128xf32>
    %611 = vector.broadcast %82 : f32 to vector<8x128xf32>
    %612 = arith.maximumf %205, %611 : vector<8x128xf32>
    %613 = vector.broadcast %182 : f32 to vector<8x128xf32>
    %614 = arith.mulf %613, %612 : vector<8x128xf32>
    %615 = arith.addf %605, %614 : vector<8x128xf32>
    %616 = vector.broadcast %83 : f32 to vector<8x128xf32>
    %617 = arith.maximumf %205, %616 : vector<8x128xf32>
    %618 = vector.broadcast %183 : f32 to vector<8x128xf32>
    %619 = arith.mulf %618, %617 : vector<8x128xf32>
    %620 = arith.addf %610, %619 : vector<8x128xf32>
    %621 = vector.broadcast %84 : f32 to vector<8x128xf32>
    %622 = arith.maximumf %205, %621 : vector<8x128xf32>
    %623 = vector.broadcast %184 : f32 to vector<8x128xf32>
    %624 = arith.mulf %623, %622 : vector<8x128xf32>
    %625 = arith.addf %615, %624 : vector<8x128xf32>
    %626 = vector.broadcast %85 : f32 to vector<8x128xf32>
    %627 = arith.maximumf %205, %626 : vector<8x128xf32>
    %628 = vector.broadcast %185 : f32 to vector<8x128xf32>
    %629 = arith.mulf %628, %627 : vector<8x128xf32>
    %630 = arith.addf %620, %629 : vector<8x128xf32>
    %631 = vector.broadcast %86 : f32 to vector<8x128xf32>
    %632 = arith.maximumf %205, %631 : vector<8x128xf32>
    %633 = vector.broadcast %186 : f32 to vector<8x128xf32>
    %634 = arith.mulf %633, %632 : vector<8x128xf32>
    %635 = arith.addf %625, %634 : vector<8x128xf32>
    %636 = vector.broadcast %87 : f32 to vector<8x128xf32>
    %637 = arith.maximumf %205, %636 : vector<8x128xf32>
    %638 = vector.broadcast %187 : f32 to vector<8x128xf32>
    %639 = arith.mulf %638, %637 : vector<8x128xf32>
    %640 = arith.addf %630, %639 : vector<8x128xf32>
    %641 = vector.broadcast %88 : f32 to vector<8x128xf32>
    %642 = arith.maximumf %205, %641 : vector<8x128xf32>
    %643 = vector.broadcast %188 : f32 to vector<8x128xf32>
    %644 = arith.mulf %643, %642 : vector<8x128xf32>
    %645 = arith.addf %635, %644 : vector<8x128xf32>
    %646 = vector.broadcast %89 : f32 to vector<8x128xf32>
    %647 = arith.maximumf %205, %646 : vector<8x128xf32>
    %648 = vector.broadcast %189 : f32 to vector<8x128xf32>
    %649 = arith.mulf %648, %647 : vector<8x128xf32>
    %650 = arith.addf %640, %649 : vector<8x128xf32>
    %651 = vector.broadcast %90 : f32 to vector<8x128xf32>
    %652 = arith.maximumf %205, %651 : vector<8x128xf32>
    %653 = vector.broadcast %190 : f32 to vector<8x128xf32>
    %654 = arith.mulf %653, %652 : vector<8x128xf32>
    %655 = arith.addf %645, %654 : vector<8x128xf32>
    %656 = vector.broadcast %91 : f32 to vector<8x128xf32>
    %657 = arith.maximumf %205, %656 : vector<8x128xf32>
    %658 = vector.broadcast %191 : f32 to vector<8x128xf32>
    %659 = arith.mulf %658, %657 : vector<8x128xf32>
    %660 = arith.addf %650, %659 : vector<8x128xf32>
    %661 = vector.broadcast %92 : f32 to vector<8x128xf32>
    %662 = arith.maximumf %205, %661 : vector<8x128xf32>
    %663 = vector.broadcast %192 : f32 to vector<8x128xf32>
    %664 = arith.mulf %663, %662 : vector<8x128xf32>
    %665 = arith.addf %655, %664 : vector<8x128xf32>
    %666 = vector.broadcast %93 : f32 to vector<8x128xf32>
    %667 = arith.maximumf %205, %666 : vector<8x128xf32>
    %668 = vector.broadcast %193 : f32 to vector<8x128xf32>
    %669 = arith.mulf %668, %667 : vector<8x128xf32>
    %670 = arith.addf %660, %669 : vector<8x128xf32>
    %671 = vector.broadcast %94 : f32 to vector<8x128xf32>
    %672 = arith.maximumf %205, %671 : vector<8x128xf32>
    %673 = vector.broadcast %194 : f32 to vector<8x128xf32>
    %674 = arith.mulf %673, %672 : vector<8x128xf32>
    %675 = arith.addf %665, %674 : vector<8x128xf32>
    %676 = vector.broadcast %95 : f32 to vector<8x128xf32>
    %677 = arith.maximumf %205, %676 : vector<8x128xf32>
    %678 = vector.broadcast %195 : f32 to vector<8x128xf32>
    %679 = arith.mulf %678, %677 : vector<8x128xf32>
    %680 = arith.addf %670, %679 : vector<8x128xf32>
    %681 = vector.broadcast %96 : f32 to vector<8x128xf32>
    %682 = arith.maximumf %205, %681 : vector<8x128xf32>
    %683 = vector.broadcast %196 : f32 to vector<8x128xf32>
    %684 = arith.mulf %683, %682 : vector<8x128xf32>
    %685 = arith.addf %675, %684 : vector<8x128xf32>
    %686 = vector.broadcast %97 : f32 to vector<8x128xf32>
    %687 = arith.maximumf %205, %686 : vector<8x128xf32>
    %688 = vector.broadcast %197 : f32 to vector<8x128xf32>
    %689 = arith.mulf %688, %687 : vector<8x128xf32>
    %690 = arith.addf %680, %689 : vector<8x128xf32>
    %691 = vector.broadcast %98 : f32 to vector<8x128xf32>
    %692 = arith.maximumf %205, %691 : vector<8x128xf32>
    %693 = vector.broadcast %198 : f32 to vector<8x128xf32>
    %694 = arith.mulf %693, %692 : vector<8x128xf32>
    %695 = arith.addf %685, %694 : vector<8x128xf32>
    %696 = vector.broadcast %99 : f32 to vector<8x128xf32>
    %697 = arith.maximumf %205, %696 : vector<8x128xf32>
    %698 = vector.broadcast %199 : f32 to vector<8x128xf32>
    %699 = arith.mulf %698, %697 : vector<8x128xf32>
    %700 = arith.addf %690, %699 : vector<8x128xf32>
    %701 = vector.broadcast %100 : f32 to vector<8x128xf32>
    %702 = arith.maximumf %205, %701 : vector<8x128xf32>
    %703 = vector.broadcast %200 : f32 to vector<8x128xf32>
    %704 = arith.mulf %703, %702 : vector<8x128xf32>
    %705 = arith.addf %695, %704 : vector<8x128xf32>
    %706 = vector.broadcast %101 : f32 to vector<8x128xf32>
    %707 = arith.maximumf %205, %706 : vector<8x128xf32>
    %708 = vector.broadcast %201 : f32 to vector<8x128xf32>
    %709 = arith.mulf %708, %707 : vector<8x128xf32>
    %710 = arith.addf %700, %709 : vector<8x128xf32>
    %711 = arith.addf %705, %710 : vector<8x128xf32>
    %cst_103 = arith.constant 0.000000e+00 : f32
    %cst_104 = arith.constant 1.000000e+00 : f32
    %712 = vector.broadcast %cst_103 : f32 to vector<8x128xf32>
    %713 = arith.maximumf %712, %711 : vector<8x128xf32>
    %714 = vector.broadcast %cst_104 : f32 to vector<8x128xf32>
    %715 = arith.minimumf %714, %713 : vector<8x128xf32>
    %716 = arith.index_cast %203 : i32 to index
    %c0_105 = arith.constant 0 : index
    %717 = vector.load %arg5[%716, %c0_105] : memref<8x128xf32, #tpu.memory_space<vmem>>, vector<8x128xf32>
    tpu.vector_store %arg5[%716, %c0_105], %715 {strides = array<i32>} : memref<8x128xf32, #tpu.memory_space<vmem>>, vector<8x128xf32>,
    %c1_i32 = arith.constant 1 : i32
    return
  }
  func.func @transform_0(%arg0: i32) -> i32 {
    %c0_i32 = arith.constant 0 : i32
    %c0_i32_0 = arith.constant 0 : i32
    return %c0_i32 : i32
  }
  func.func @transform_1(%arg0: i32) -> i32 {
    %c0_i32 = arith.constant 0 : i32
    %c0_i32_0 = arith.constant 0 : i32
    return %c0_i32 : i32
  }
  func.func @transform_2(%arg0: i32) -> i32 {
    %c0_i32 = arith.constant 0 : i32
    %c0_i32_0 = arith.constant 0 : i32
    return %c0_i32 : i32
  }
  func.func @transform_3(%arg0: i32) -> (i32, i32) {
    %c0_i32 = arith.constant 0 : i32
    %c0_i32_0 = arith.constant 0 : i32
    return %arg0, %c0_i32 : i32, i32
  }
  func.func @transform_4(%arg0: i32) -> (i32, i32) {
    %c0_i32 = arith.constant 0 : i32
    %c0_i32_0 = arith.constant 0 : i32
    return %arg0, %c0_i32 : i32, i32
  }
}

</mosaic_0001>

<bundles_post_ra>
// kernel: tpu_custom_call.1
= control target key start
LH: loop header
LB: loop body
LE: loop exit
PB: predicated region body
PF: predicated region fallthrough
CT: control target
= control target key end

     0   :  { %s2770_s0 = inlined_call_operand.hbm [shape: f32[100], index: 0, kind: input, shape index: {}]   ;;  %s2771_s1 = inlined_call_operand.vmem [shape: f32[100], index: 1, kind: input, shape index: {}]   ;;  %s2772_s2 = inlined_call_operand.vmem [shape: f32[2], index: 2, kind: input, shape index: {}]   ;;  %s2773_s3 = inlined_call_operand.hbm [shape: f32[16,128], index: 3, kind: input, shape index: {}]   ;;  %s2774_s4 = inlined_call_operand.hbm [shape: f32[16,128], index: 4, kind: output, shape index: {}]  }
   0x1   :  { %2785 = sst [smem:[#allocation30_spill]] %s2770_s0 }
   0x2   :  { %2786 = sst [smem:[#allocation31_spill]] %s2771_s1 }
   0x3   :  { %2787 = sst [smem:[#allocation32_spill]] %s2772_s2 }
   0x4   :  { %2788 = sst [smem:[#allocation33_spill]] %s2773_s3 }
   0x5   :  { %9 = vsyncpa [#allocation5], 0 }
   0x6   :  { %10 = vsyncpa [#allocation6], 0 }
   0x7   :  { %11 = vsyncpa [#allocation9], 0 }
   0x8   :  { %12 = vsyncpa [#allocation3], 0 }
   0x9   :  { %14 = vsyncpa [#allocation3 + $0x1], 0 }
   0xa   :  { %15 = vsyncpa [#allocation4], 0 }
   0xb   :  { %17 = vsyncpa [#allocation4 + $0x1], 0  ;;  %s1558_s15 = smov 0   ;;  %s1560_s16 = smov 0  }
   0xc   :  { %s1562_s17 = smov 0   ;;  %s1564_s18 = smov 0  }
   0xd LB: > { %2789 = sst [smem:[#allocation17_spill]] %s1518_s16  ;;  %s1579_s19 = sadd.s32 4294967295, %s1526_s18   ;;  %s1526_s18 = sphi %s1564_s18, %s2833_s18   ;;  %s1522_s17 = sphi %s1562_s17, %s2836_s17   ;;  %s1518_s16 = sphi %s1560_s16, %s2835_s16   ;;  %s1514_s15 = sphi %s1558_s15, %s2834_s15  }
   0xe   : > { %2790 = sst [smem:[#allocation18_spill]] %s1522_s17  ;;  %s1080_s20 = sadd.s32 4294967294, %s1526_s18  }
   0xf   : > { %2791 = sst [smem:[#allocation19_spill]] %s1526_s18  ;;  %p106_p0 = scmp.ne.s32.totalorder %s1518_s16, %s1514_s15 }
  0x10   : > { %p2775_p1 = scmp.eq.s32.totalorder %s1579_s19, 0  ;;  %p136_p3 = scmp.eq.s32.totalorder %s1080_s20, 1 }
  0x11   : > { %p1081_p5 = scmp.ge.s32.totalorder %s1526_s18, 1  ;;  %p143_p7 = scmp.lt.s32.totalorder %s1526_s18, 3 }
  0x12   : > { %p1588_p4 = por %p2775_p1, %p106_p0  ;;  %p1593_p6 = por %p136_p3, %p106_p0 }
  0x13   : > { %p1598_p8 = pnand %p1081_p5, %p143_p7  ;;  %s2796_s1 = sld [smem:[#allocation31_spill]] }
  0x14   : > { %s2792_s21 = scalar_select %p1588_p4, 1, 0 }
  0x15   : > { %s2793_s22 = scalar_select %p1593_p6, 1, 0 }
  0x16   : > { %p1313_p10 = pneg %p1598_p8  ;;  %s2797_s2 = sld [smem:[#allocation32_spill]] }
  0x17   : > { %2794 = sst [smem:[#allocation20_spill]] %s2793_s22  ;;  %s1620_s5 = sadd.s32 1, %s1526_s18  }
  0x18   : > { %p1613_p11 = pnand %p1313_p10, %p2775_p1  ;;  %2799 = sst [smem:[#allocation21_spill]] %s1620_s5 }
  0x19   : > { %s165_s26 = sshll.u32 %s2796_s1, 4  ;;  %s2800_s0 = sld [smem:[#allocation30_spill]]  ;;  %s166_s26 = int_to_ptr.vmem [resolvable:$true] %s165_s26 }
  0x1a   : > { %p1377_p13 = pneg %p1613_p11 }
  0x1c   : > { %s176_s29 = sshll.u32 %s2797_s2, 4  ;;  %s1617_s29 = int_to_ptr.vmem [resolvable:$true] %s176_s29 }
  0x1f   : > { %s1375_s8 = scalar_lea.hbm %s2800_s0, 16 }
  0x20   : > { %p1376_p12 = scmp.ne.s32.totalorder %s2800_s0, %s1375_s8  ;;  %p1382_p5 = scmp.lt.u32.totalorder %s1375_s8, %s2800_s0 }
  0x22   : > { %p1378_p0 = pnand %p1377_p13, %p1376_p12 }
  0x24   : > { %p1379_p3 = pneg %p1378_p0 }
  0x26   : > { %p1384_p7 = pnand %p1382_p5, %p1379_p3 }
  0x28   : > { %1387 = shalt.err (!%p1384_p7)
}
  0x29   : > { %s1528_s13 = smov [#allocation2]   ;;  %s1388_s24 = scalar_lea.vmem %s166_s26, 16 }
  0x2a   : > { %1316 = dma.hbm_to_smem (!%p1613_p11), %s2800_s0, 16, %s1528_s13, [#allocation5]  }
  0x2b   : > { %p1389_p10 = scmp.ne.s32.totalorder %s166_s26, %s1388_s24  ;;  %p1396_p9 = scmp.lt.s32.totalorder %s166_s26, %s166_s26 }
  0x2c   : > { %p1397_p1 = scmp.lt.s32.totalorder %s1388_s24, %s1388_s24 }
  0x2d   : > { %p1391_p12 = pnand %p1389_p10, %p1377_p13 }
  0x2e   : > { %p1398_p2 = por %p1397_p1, %p1396_p9 }
  0x2f   : > { %p1392_p0 = pneg %p1391_p12 }
  0x31   : > { %p1399_p6 = pnand %p1398_p2, %p1392_p0 }
  0x33   : > { %1402 = shalt.err (!%p1399_p6)
}
  0x34   : > { %s1529_s25 = smov [#allocation7]   ;;  %s1403_s27 = scalar_lea.vmem %s1617_s29, 16 }
  0x35   : > { %1319 = dma.vmem_to_smem (!%p1613_p11), %s166_s26, 16, %s1529_s25, [#allocation6]  }
  0x36   : > { %p1404_p3 = scmp.ne.s32.totalorder %s1617_s29, %s1403_s27  ;;  %p1411_p10 = scmp.lt.s32.totalorder %s1617_s29, %s1617_s29 }
  0x37   : > { %p1412_p12 = scmp.lt.s32.totalorder %s1403_s27, %s1403_s27 }
  0x38   : > { %p1406_p5 = pnand %p1404_p3, %p1377_p13 }
  0x39   : > { %p1413_p1 = por %p1412_p12, %p1411_p10 }
  0x3a   : > { %p1407_p7 = pneg %p1406_p5 }
  0x3c   : > { %p1414_p2 = pnand %p1413_p1, %p1407_p7 }
  0x3e   : > { %1417 = shalt.err (!%p1414_p2)
}
  0x3f   : > { %s1530_s28 = smov [#allocation8]   ;;  %s90_s26 = ssub.s32 %s1526_s18, %s1620_s5 }
  0x40   : > { %1322 = dma.vmem_to_smem (!%p1613_p11), %s1617_s29, 16, %s1530_s28, [#allocation9]  }
  0x41   : > { %s93_s6 = sadd.s32 1, %s1522_s17  ;;  %p91_p6 = scmp.eq.s32.totalorder %s90_s26, 0 }
  0x42   : > { %p100_p9 = scmp.ne.s32.totalorder %s1522_s17, %s1518_s16  ;;  %p101_p13 = scmp.eq.s32.totalorder %s1526_s18, 0 }
  0x43   : > { %p1334_p0 = scmp.lt.s32.totalorder %s1526_s18, 2  ;;  %p2802_p5 = scmp.eq.s32.totalorder %s1579_s19, 1 }
  0x44   : > { %s1664_s30 = scalar_select %p91_p6, %s1522_s17, %s93_s6  }
  0x45   : > { %p102_p3 = por %p101_p13, %p100_p9  ;;  %p1668_p7 = por %p2802_p5, %p100_p9 }
  0x46   : > { %2801 = sst [smem:[#allocation22_spill]] %s1664_s30  ;;  %s187_s8 = sand.u32 1, %s1522_s17  }
  0x47   : > { %s2803_s7 = scalar_select %p1668_p7, 1, 0 }
  0x48   : > { %s1087_s9 = sshll.u32 %s1526_s18, 7  ;;  %s1086_s10 = sshll.u32 %s187_s8, 3 }
  0x49   : > { %s2804_s3 = sld [smem:[#allocation33_spill]]  ;;  %s191_s13 = scalar_lea.vmem [#allocation10], %s1086_s10 }
  0x4a   : > { %s198_s14 = sshll.u32 %s191_s13, 4  ;;  %p1679_p11 = pnand %p1334_p0, %p102_p3  ;;  %s1683_s14 = int_to_ptr.vmem [resolvable:$true] %s198_s14 }
  0x4b   : > { %s188_s24 = scalar_lea.sflag [#allocation3], %s187_s8 }
  0x4c   : > { %p1420_p12 = pneg %p1679_p11 }
  0x4f   : > { %s1677_s29 = scalar_lea.hbm %s2804_s3, %s1087_s9  ;;  %s1423_s26 = scalar_lea.hbm %s2804_s3, 256 }
  0x50   : > { %s1418_s25 = scalar_lea.hbm %s1677_s29, 128  ;;  %p1424_p6 = scmp.lt.u32.totalorder %s1677_s29, %s2804_s3 }
  0x51   : > { %p1419_p10 = scmp.ne.s32.totalorder %s1677_s29, %s1418_s25  ;;  %p1425_p9 = scmp.lt.u32.totalorder %s1423_s26, %s1418_s25 }
  0x52   : > { %p1427_p0 = scmp.lt.u32.totalorder %s1418_s25, %s1677_s29 }
  0x53   : > { %p1421_p1 = pnand %p1420_p12, %p1419_p10  ;;  %p1426_p13 = por %p1425_p9, %p1424_p6 }
  0x55   : > { %p1422_p2 = pneg %p1421_p1  ;;  %p1428_p3 = por %p1427_p0, %p1426_p13 }
  0x57   : > { %p1429_p5 = pnand %p1428_p3, %p1422_p2 }
  0x59   : > { %1432 = shalt.err (!%p1429_p5)
}
  0x5a   : > { %s1433_s8 = scalar_lea.vmem %s1683_s14, 128  ;;  %s1531_s10 = smov [#allocation10]  }
  0x5b   : > { %p1434_p10 = scmp.ne.s32.totalorder %s1683_s14, %s1433_s8  ;;  %s1438_s11 = sshll.u32 %s1531_s10, 4  ;;  %s1439_s11 = int_to_ptr.vmem [resolvable:$false] %s1438_s11 }
  0x5c   : > { %s1440_s12 = scalar_lea.vmem %s1439_s11, 256  ;;  %p1441_p4 = scmp.lt.s32.totalorder %s1683_s14, %s1439_s11 }
  0x5d   : > { %p1436_p1 = pnand %p1434_p10, %p1420_p12  ;;  %p1442_p6 = scmp.lt.s32.totalorder %s1440_s12, %s1433_s8 }
  0x5f   : > { %p1437_p7 = pneg %p1436_p1  ;;  %p1443_p9 = por %p1442_p6, %p1441_p4 }
  0x61   : > { %p1444_p13 = pnand %p1443_p9, %p1437_p7 }
  0x63   : > { %1447 = shalt.err (!%p1444_p13)
}
  0x64   : > { %1326 = dma.hbm_to_vmem [thread:$0]  (!%p1679_p11), %s1677_s29, 128, %s1683_s14, %s188_s24  }
  0x65   : > { %207 = sbr.rel (%p1598_p8) target bundleno = 283 (0x11b), region = 36 }
  0x6c   : > { %p2806_p12 = scmp.eq.s32.totalorder %s1579_s19, 0 }
  0x6e   : > { %1493 = dma.done.wait (%p2806_p12), [#allocation5], 16   ;;  %p2807_p2 = pmov %p2806_p12 }
  0x70   : > { %1495 = vsyncadd (%p2807_p2), [#allocation5], 4294967280  ;;  %p2808_p0 = pmov %p2807_p2 }
  0x72   : > { %1497 = dma.done.wait (%p2808_p0), [#allocation6], 16   ;;  %p2809_p4 = pmov %p2808_p0 }
  0x73   : > { %p2810_p7 = pmov %p2808_p0 }
  0x74   : > { %1499 = vsyncadd (%p2809_p4), [#allocation6], 4294967280 }
  0x75   : > { %1501 = dma.done.wait (%p2810_p7), [#allocation9], 16   ;;  %p2811_p11 = pmov %p2808_p0 }
  0x76   : > { %s1725_s23 = sand.u32 1, %s1518_s16   ;;  %p2812_p8 = scmp.ne.s32.totalorder %s2792_s21, 0 }
  0x77   : > { %1503 = vsyncadd (%p2811_p11), [#allocation9], 4294967280  ;;  %s2778_s29 = sshll.u32 %s1725_s23, 3  ;;  %s222_s13 = scalar_lea.sflag [#allocation3], %s1725_s23 }
  0x78   : > { %s1731_s14 = scalar_lea.vmem [#allocation10], %s2778_s29 }
  0x79   : > { %1505 = dma.done.wait (%p2812_p8), %s222_s13, 128  }
  0x7a   : > { %1507 = vsyncadd (%p2812_p8), %s222_s13, 4294967168 }
  0x7b   : > { %230 = sfence }
  0x7c   : > { %s1094_s20 = sld [smem:[#allocation8 + $0x1]]  ;;  %s1737_s24 = sld [smem:[#allocation8]]  ;;  %v1766_v0 = vld [vmem:[%s1731_s14] sm:$0xff] }
  0x7d   : > { %s1739_s25 = sld [smem:[#allocation2]]  ;;  %s1741_s27 = sld [smem:[#allocation2 + $0x1]] }
  0x7e   : > { %s1743_s28 = sld [smem:[#allocation2 + $0x2]]  ;;  %s1745_s26 = sld [smem:[#allocation2 + $0x3]] }
  0x7f   : > { %s1747_s6 = sld [smem:[#allocation2 + $0x4]]  ;;  %s1749_s9 = sld [smem:[#allocation2 + $0x5]] }
  0x80   : > { %s1751_s8 = sld [smem:[#allocation2 + $0x6]]  ;;  %s1753_s21 = sld [smem:[#allocation2 + $0x7]] }
  0x81   : > { %s1755_s10 = sld [smem:[#allocation2 + $0x8]]  ;;  %s1757_s11 = sld [smem:[#allocation2 + $0x9]] }
  0x82   : > { %s1759_s12 = sld [smem:[#allocation2 + $0xa]]  ;;  %s1761_s13 = sld [smem:[#allocation2 + $0xb]]  ;;  %v454_v1 = vstv %s1094_s20  ;;  %v456_v5 = vstv %s1737_s24 }
  0x83   : > { %s1763_s29 = sld [smem:[#allocation2 + $0xc]]  ;;  %s1768_s0 = sld [smem:[#allocation2 + $0xd]]  ;;  %v455_v2 = vmul.f32 %v454_v1, %v1766_v0  ;;  %v458_v3 = vstv %s1739_s25  ;;  %v463_v4 = vstv %s1741_s27 }
  0x84   : > { %s1770_s1 = sld [smem:[#allocation2 + $0xe]]  ;;  %s1772_s2 = sld [smem:[#allocation2 + $0xf]]  ;;  %v468_v6 = vstv %s1743_s28  ;;  %v473_v7 = vstv %s1745_s26  ;;  %v1802_v11 = vmax.f32 %v1766_v0, %v458_v3  ;;  %v1805_v12 = vmax.f32 %v1766_v0, %v463_v4 }
  0x85   : > { %s1774_s3 = sld [smem:[#allocation2 + $0x10]]  ;;  %s1776_s30 = sld [smem:[#allocation2 + $0x11]]  ;;  %v478_v8 = vstv %s1747_s6  ;;  %v483_v9 = vstv %s1749_s9  ;;  %v1812_v14 = vadd.f32 %v456_v5, %v455_v2  ;;  %v1815_v15 = vmax.f32 %v1766_v0, %v468_v6 }
  0x86   : > { %s1778_s17 = sld [smem:[#allocation2 + $0x12]]  ;;  %s1783_s20 = sld [smem:[#allocation2 + $0x13]]  ;;  %v488_v10 = vstv %s1751_s8  ;;  %v493_v13 = vstv %s1753_s21  ;;  %v1818_v16 = vmax.f32 %v1766_v0, %v473_v7  ;;  %v1821_v17 = vmax.f32 %v1766_v0, %v478_v8 }
  0x87   : > { %s1785_s16 = sld [smem:[#allocation2 + $0x14]]  ;;  %s1791_s5 = sld [smem:[#allocation2 + $0x15]]  ;;  %v1828_v18 = vmax.f32 %v1766_v0, %v483_v9  ;;  %v1831_v19 = vmax.f32 %v1766_v0, %v488_v10  ;;  %v498_v20 = vstv %s1755_s10  ;;  %v503_v21 = vstv %s1757_s11 }
  0x88   : > { %s1793_s18 = sld [smem:[#allocation2 + $0x16]]  ;;  %s1797_s22 = sld [smem:[#allocation2 + $0x17]]  ;;  %v1840_v22 = vmax.f32 %v1766_v0, %v493_v13  ;;  %v508_v23 = vstv %s1759_s12  ;;  %v513_v24 = vstv %s1761_s13  ;;  %v1858_v30 = vmax.f32 %v1766_v0, %v498_v20 }
  0x89   : > { %s1799_s25 = sld [smem:[#allocation2 + $0x18]]  ;;  %s1808_s24 = sld [smem:[#allocation2 + $0x19]]  ;;  %v518_v25 = vstv %s1763_s29  ;;  %v523_v26 = vstv %s1768_s0  ;;  %v1861_v31 = vmax.f32 %v1766_v0, %v503_v21  ;;  %v1870_v34 = vmax.f32 %v1766_v0, %v508_v23 }
  0x8a   : > { %s1810_s27 = sld [smem:[#allocation2 + $0x1a]]  ;;  %s1823_s28 = sld [smem:[#allocation2 + $0x1b]]  ;;  %v528_v27 = vstv %s1770_s1  ;;  %v533_v28 = vstv %s1772_s2  ;;  %v1873_v35 = vmax.f32 %v1766_v0, %v513_v24  ;;  %v1876_v36 = vmax.f32 %v1766_v0, %v518_v25 }
  0x8b   : > { %s1825_s26 = sld [smem:[#allocation2 + $0x1c]]  ;;  %s1835_s6 = sld [smem:[#allocation2 + $0x1d]]  ;;  %v538_v29 = vstv %s1774_s3  ;;  %v543_v32 = vstv %s1776_s30  ;;  %v1884_v38 = vmax.f32 %v1766_v0, %v523_v26  ;;  %v1887_v39 = vmax.f32 %v1766_v0, %v528_v27 }
  0x8c   : > { %s1837_s9 = sld [smem:[#allocation2 + $0x1e]]  ;;  %s1845_s8 = sld [smem:[#allocation2 + $0x1f]]  ;;  %v548_v33 = vstv %s1778_s17  ;;  %v553_v37 = vstv %s1783_s20  ;;  %v1890_v40 = vmax.f32 %v1766_v0, %v533_v28  ;;  %v1893_v41 = vmax.f32 %v1766_v0, %v538_v29 }
  0x8d   : > { %s1847_s21 = sld [smem:[#allocation2 + $0x20]]  ;;  %s1853_s10 = sld [smem:[#allocation2 + $0x21]]  ;;  %v1900_v42 = vmax.f32 %v1766_v0, %v543_v32  ;;  %v1903_v43 = vmax.f32 %v1766_v0, %v548_v33  ;;  %v558_v44 = vstv %s1785_s16  ;;  %v563_v45 = vstv %s1791_s5 }
  0x8e   : > { %s1855_s11 = sld [smem:[#allocation2 + $0x22]]  ;;  %s1865_s29 = sld [smem:[#allocation2 + $0x23]]  ;;  %v1912_v46 = vmax.f32 %v1766_v0, %v553_v37  ;;  %v568_v47 = vstv %s1793_s18  ;;  %v573_v48 = vstv %s1797_s22  ;;  %v1930_v54 = vmax.f32 %v1766_v0, %v558_v44 }
  0x8f   : > { %s1867_s12 = sld [smem:[#allocation2 + $0x24]]  ;;  %s1879_s0 = sld [smem:[#allocation2 + $0x25]]  ;;  %v578_v49 = vstv %s1799_s25  ;;  %v583_v50 = vstv %s1808_s24  ;;  %v1933_v55 = vmax.f32 %v1766_v0, %v563_v45  ;;  %v1942_v58 = vmax.f32 %v1766_v0, %v568_v47 }
  0x90   : > { %s1881_s1 = sld [smem:[#allocation2 + $0x26]]  ;;  %s1895_s2 = sld [smem:[#allocation2 + $0x27]]  ;;  %v588_v51 = vstv %s1810_s27  ;;  %v593_v52 = vstv %s1823_s28  ;;  %v1945_v59 = vmax.f32 %v1766_v0, %v573_v48  ;;  %v1948_v60 = vmax.f32 %v1766_v0, %v578_v49 }
  0x91   : > { %s1897_s3 = sld [smem:[#allocation2 + $0x28]]  ;;  %s1907_s17 = sld [smem:[#allocation2 + $0x29]]  ;;  %v598_v53 = vstv %s1825_s26  ;;  %v603_v56 = vstv %s1835_s6  ;;  %v1956_v62 = vmax.f32 %v1766_v0, %v583_v50  ;;  %v1959_v63 = vmax.f32 %v1766_v0, %v588_v51 }
  0x92   : > { %s1909_s30 = sld [smem:[#allocation2 + $0x2a]]  ;;  %s1917_s13 = sld [smem:[#allocation2 + $0x2b]]  ;;  %v608_v57 = vstv %s1837_s9  ;;  %v613_v61 = vstv %s1845_s8  ;;  %v1962_v1 = vmax.f32 %v1766_v0, %v593_v52  ;;  %v1965_v2 = vmax.f32 %v1766_v0, %v598_v53 }
  0x93   : > { %s1919_s20 = sld [smem:[#allocation2 + $0x2c]]  ;;  %s1925_s16 = sld [smem:[#allocation2 + $0x2d]]  ;;  %v1972_v3 = vmax.f32 %v1766_v0, %v603_v56  ;;  %v1975_v4 = vmax.f32 %v1766_v0, %v608_v57  ;;  %v618_v5 = vstv %s1847_s21  ;;  %v623_v6 = vstv %s1853_s10 }
  0x94   : > { %s1927_s5 = sld [smem:[#allocation2 + $0x2e]]  ;;  %s1937_s18 = sld [smem:[#allocation2 + $0x2f]]  ;;  %v1984_v7 = vmax.f32 %v1766_v0, %v613_v61  ;;  %v628_v8 = vstv %s1855_s11  ;;  %v633_v9 = vstv %s1865_s29  ;;  %v1996_v24 = vmax.f32 %v1766_v0, %v618_v5 }
  0x95   : > { %s1939_s22 = sld [smem:[#allocation2 + $0x30]]  ;;  %s1951_s25 = sld [smem:[#allocation2 + $0x31]]  ;;  %v638_v10 = vstv %s1867_s12  ;;  %v643_v13 = vstv %s1879_s0  ;;  %v1999_v25 = vmax.f32 %v1766_v0, %v623_v6  ;;  %v2006_v28 = vmax.f32 %v1766_v0, %v628_v8 }
  0x96   : > { %s1953_s24 = sld [smem:[#allocation2 + $0x32]]  ;;  %s1967_s27 = sld [smem:[#allocation2 + $0x33]]  ;;  %v648_v20 = vstv %s1881_s1  ;;  %v653_v21 = vstv %s1895_s2  ;;  %v2009_v29 = vmax.f32 %v1766_v0, %v633_v9  ;;  %v2012_v32 = vmax.f32 %v1766_v0, %v638_v10 }
  0x97   : > { %s1969_s28 = sld [smem:[#allocation2 + $0x34]]  ;;  %s1979_s26 = sld [smem:[#allocation2 + $0x35]]  ;;  %v658_v23 = vstv %s1897_s3  ;;  %v663_v26 = vstv %s1907_s17  ;;  %v2018_v37 = vmax.f32 %v1766_v0, %v643_v13  ;;  %v2021_v44 = vmax.f32 %v1766_v0, %v648_v20 }
  0x98   : > { %s1981_s6 = sld [smem:[#allocation2 + $0x36]]  ;;  %s1989_s9 = sld [smem:[#allocation2 + $0x37]]  ;;  %v668_v27 = vstv %s1909_s30  ;;  %v673_v33 = vstv %s1917_s13  ;;  %v2024_v45 = vmax.f32 %v1766_v0, %v653_v21  ;;  %v2027_v47 = vmax.f32 %v1766_v0, %v658_v23 }
  0x99   : > { %s2003_s8 = sld [smem:[#allocation2 + $0x38]]  ;;  %s2015_s21 = sld [smem:[#allocation2 + $0x39]]  ;;  %v2034_v48 = vmax.f32 %v1766_v0, %v663_v26  ;;  %v2037_v49 = vmax.f32 %v1766_v0, %v668_v27  ;;  %v678_v50 = vstv %s1919_s20  ;;  %v683_v51 = vstv %s1925_s16 }
  0x9a   : > { %s2029_s10 = sld [smem:[#allocation2 + $0x3a]]  ;;  %s2031_s11 = sld [smem:[#allocation7]]  ;;  %v2046_v52 = vmax.f32 %v1766_v0, %v673_v33  ;;  %v688_v53 = vstv %s1927_s5  ;;  %v693_v56 = vstv %s1937_s18  ;;  %v2064_v9 = vmax.f32 %v1766_v0, %v678_v50 }
  0x9b   : > { %s2041_s29 = sld [smem:[#allocation7 + $0x1]]  ;;  %s2043_s12 = sld [smem:[#allocation7 + $0x2]]  ;;  %v698_v57 = vstv %s1939_s22  ;;  %v703_v61 = vstv %s1951_s25  ;;  %v2067_v10 = vmax.f32 %v1766_v0, %v683_v51  ;;  %v2076_v21 = vmax.f32 %v1766_v0, %v688_v53 }
  0x9c   : > { %s2051_s0 = sld [smem:[#allocation7 + $0x3]]  ;;  %s2053_s1 = sld [smem:[#allocation7 + $0x4]]  ;;  %v708_v5 = vstv %s1953_s24  ;;  %v713_v6 = vstv %s1967_s27  ;;  %v2079_v23 = vmax.f32 %v1766_v0, %v693_v56  ;;  %v2082_v26 = vmax.f32 %v1766_v0, %v698_v57 }
  0x9d   : > { %v718_v8 = vstv %s1969_s28  ;;  %s2059_s2 = sld [smem:[#allocation7 + $0x5]]  ;;  %s2061_s3 = sld [smem:[#allocation7 + $0x6]]  ;;  %v723_v13 = vstv %s1979_s26  ;;  %v2090_v33 = vmax.f32 %v1766_v0, %v703_v61  ;;  %v2093_v50 = vmax.f32 %v1766_v0, %v708_v5 }
  0x9e   : > { %v728_v20 = vstv %s1981_s6  ;;  %s2071_s17 = sld [smem:[#allocation7 + $0x7]]  ;;  %s2073_s30 = sld [smem:[#allocation7 + $0x8]]  ;;  %v733_v27 = vstv %s1989_s9  ;;  %v2096_v51 = vmax.f32 %v1766_v0, %v713_v6  ;;  %v2099_v53 = vmax.f32 %v1766_v0, %v718_v8 }
  0x9f   : > { %s2085_s13 = sld [smem:[#allocation7 + $0x9]]  ;;  %s2087_s20 = sld [smem:[#allocation7 + $0xa]]  ;;  %2813 = vst [vmem:[#allocation23_spill] sm:$0xff] %v2090_v33  ;;  %2814 = vst [vmem:[#allocation24_spill] sm:$0xff] %v2093_v50  ;;  %v2107_v57 = vmax.f32 %v1766_v0, %v723_v13  ;;  %v2110_v61 = vmax.f32 %v1766_v0, %v728_v20  ;;  %v738_v5 = vstv %s2003_s8 }
  0xa0   : > { %2815 = vst [vmem:[#allocation25_spill] sm:$0xff] %v2096_v51  ;;  %2816 = vst [vmem:[#allocation26_spill] sm:$0xff] %v2099_v53  ;;  %s2101_s16 = sld [smem:[#allocation7 + $0xb]]  ;;  %s2103_s5 = sld [smem:[#allocation7 + $0xc]]  ;;  %v460_v56 = vstv %s2031_s11  ;;  %v2121_v51 = vmax.f32 %v1766_v0, %v733_v27 }
  0xa1   : > { %2817 = vst [vmem:[#allocation27_spill] sm:$0xff] %v2107_v57  ;;  %2818 = vst [vmem:[#allocation28_spill] sm:$0xff] %v2110_v61  ;;  %s2113_s18 = sld [smem:[#allocation7 + $0xd]]  ;;  %s2115_s22 = sld [smem:[#allocation7 + $0xe]]  ;;  %v461_v6 = vmul.f32 %v460_v56, %v1802_v11  ;;  %v465_v8 = vstv %s2041_s29  ;;  %v470_v53 = vstv %s2043_s12 }
  0xa2   : > { %2819 = vst [vmem:[#allocation29_spill] sm:$0xff] %v2121_v51  ;;  %s2123_s25 = sld [smem:[#allocation2 + $0x3b]]  ;;  %s2125_s24 = sld [smem:[#allocation7 + $0xf]]  ;;  %v466_v13 = vmul.f32 %v465_v8, %v1805_v12  ;;  %v471_v20 = vmul.f32 %v470_v53, %v1815_v15  ;;  %v475_v61 = vstv %s2051_s0  ;;  %v480_v57 = vstv %s2053_s1 }
  0xa3   : > { %s2131_s27 = sld [smem:[#allocation2 + $0x3c]]  ;;  %v462_v11 = vadd.f32 %v461_v6, %v1812_v14  ;;  %v476_v56 = vmul.f32 %v475_v61, %v1818_v16  ;;  %v481_v27 = vmul.f32 %v480_v57, %v1821_v17  ;;  %v485_v51 = vstv %s2059_s2  ;;  %s2137_s28 = sld [smem:[#allocation7 + $0x10]] }
  0xa4   : > { %s2139_s26 = sld [smem:[#allocation7 + $0x11]]  ;;  %v486_v12 = vmul.f32 %v485_v51, %v1828_v18  ;;  %v490_v15 = vstv %s2061_s3  ;;  %v495_v53 = vstv %s2071_s17  ;;  %v500_v8 = vstv %s2073_s30  ;;  %s2145_s6 = sld [smem:[#allocation7 + $0x12]] }
  0xa5   : > { %v472_v14 = vadd.f32 %v471_v20, %v462_v11  ;;  %v477_v16 = vadd.f32 %v476_v56, %v466_v13  ;;  %v491_v17 = vmul.f32 %v490_v15, %v1831_v19  ;;  %v496_v57 = vmul.f32 %v495_v53, %v1840_v22  ;;  %s2149_s9 = sld [smem:[#allocation2 + $0x3d]]  ;;  %s2151_s8 = sld [smem:[#allocation7 + $0x13]] }
  0xa6   : > { %v505_v61 = vstv %s2085_s13  ;;  %v510_v6 = vstv %s2087_s20  ;;  %v515_v18 = vstv %s2101_s16  ;;  %v743_v51 = vstv %s2015_s21  ;;  %s2159_s11 = sld [smem:[#allocation7 + $0x14]]  ;;  %s2161_s29 = sld [smem:[#allocation7 + $0x15]] }
  0xa7   : > { %v482_v50 = vadd.f32 %v481_v27, %v472_v14  ;;  %v487_v33 = vadd.f32 %v486_v12, %v477_v16  ;;  %v501_v20 = vmul.f32 %v500_v8, %v1858_v30  ;;  %v506_v13 = vmul.f32 %v505_v61, %v1861_v31  ;;  %s2169_s21 = sld [smem:[#allocation2 + $0x3e]]  ;;  %s2175_s0 = sld [smem:[#allocation2 + $0x3f]] }
  0xa8   : > { %v511_v19 = vmul.f32 %v510_v6, %v1870_v34  ;;  %v520_v22 = vstv %s2103_s5  ;;  %v525_v11 = vstv %s2113_s18  ;;  %v2167_v56 = vmax.f32 %v1766_v0, %v738_v5  ;;  %s2171_s12 = sld [smem:[#allocation7 + $0x16]]  ;;  %s2177_s1 = sld [smem:[#allocation7 + $0x17]] }
  0xa9   : > { %v492_v30 = vadd.f32 %v491_v17, %v482_v50  ;;  %v497_v27 = vadd.f32 %v496_v57, %v487_v33  ;;  %v516_v31 = vmul.f32 %v515_v18, %v1873_v35  ;;  %v530_v12 = vstv %s2115_s22  ;;  %s2185_s2 = sld [smem:[#allocation2 + $0x40]]  ;;  %s2191_s17 = sld [smem:[#allocation7 + $0x19]] }
  0xaa   : > { %v535_v34 = vstv %s2125_s24  ;;  %v2181_v5 = vmax.f32 %v1766_v0, %v743_v51  ;;  %v748_v15 = vstv %s2029_s10  ;;  %v753_v53 = vstv %s2123_s25  ;;  %s2189_s3 = sld [smem:[#allocation7 + $0x18]]  ;;  %s2197_s10 = sld [smem:[#allocation7 + $0x1a]] }
  0xab   : > { %v502_v33 = vadd.f32 %v501_v20, %v492_v30  ;;  %v507_v50 = vadd.f32 %v506_v13, %v497_v27  ;;  %v521_v35 = vmul.f32 %v520_v22, %v1876_v36  ;;  %v526_v8 = vmul.f32 %v525_v11, %v1884_v38  ;;  %s2201_s30 = sld [smem:[#allocation2 + $0x41]]  ;;  %s2203_s13 = sld [smem:[#allocation7 + $0x1b]] }
  0xac   : > { %v531_v14 = vmul.f32 %v530_v12, %v1887_v39  ;;  %v540_v16 = vstv %s2137_s28  ;;  %v545_v17 = vstv %s2139_s26  ;;  %v758_v57 = vstv %s2131_s27  ;;  %s2215_s20 = sld [smem:[#allocation7 + $0x1c]]  ;;  %s2217_s16 = sld [smem:[#allocation7 + $0x1d]] }
  0xad   : > { %v512_v61 = vadd.f32 %v511_v19, %v502_v33  ;;  %v517_v6 = vadd.f32 %v516_v31, %v507_v50  ;;  %v536_v18 = vmul.f32 %v535_v34, %v1890_v40  ;;  %v550_v36 = vstv %s2145_s6  ;;  %s2225_s5 = sld [smem:[#allocation2 + $0x42]]  ;;  %s2227_s18 = sld [smem:[#allocation7 + $0x1e]] }
  0xae   : > { %v555_v38 = vstv %s2151_s8  ;;  %v2207_v51 = vmax.f32 %v1766_v0, %v748_v15  ;;  %v2210_v39 = vmax.f32 %v1766_v0, %v753_v53  ;;  %v763_v20 = vstv %s2149_s9  ;;  %s2231_s22 = sld [smem:[#allocation2 + $0x43]]  ;;  %s2233_s25 = sld [smem:[#allocation7 + $0x1f]] }
  0xaf   : > { %v522_v13 = vadd.f32 %v521_v35, %v512_v61  ;;  %v527_v19 = vadd.f32 %v526_v8, %v517_v6  ;;  %v541_v22 = vmul.f32 %v540_v16, %v1893_v41  ;;  %v546_v40 = vmul.f32 %v545_v17, %v1900_v42  ;;  %s2241_s24 = sld [smem:[#allocation2 + $0x44]]  ;;  %s2245_s27 = sld [smem:[#allocation7 + $0x20]] }
  0xb0   : > { %v551_v11 = vmul.f32 %v550_v36, %v1903_v43  ;;  %v560_v30 = vstv %s2159_s11  ;;  %v565_v27 = vstv %s2161_s29  ;;  %v2223_v31 = vmax.f32 %v1766_v0, %v758_v57  ;;  %s2247_s28 = sld [smem:[#allocation7 + $0x21]]  ;;  %s2253_s26 = sld [smem:[#allocation7 + $0x22]] }
  0xb1   : > { %v532_v41 = vadd.f32 %v531_v14, %v522_v13  ;;  %v537_v12 = vadd.f32 %v536_v18, %v527_v19  ;;  %v556_v42 = vmul.f32 %v555_v38, %v1912_v46  ;;  %v570_v34 = vstv %s2171_s12  ;;  %s2257_s6 = sld [smem:[#allocation2 + $0x45]]  ;;  %s2259_s9 = sld [smem:[#allocation7 + $0x23]] }
  0xb2   : > { %v575_v43 = vstv %s2177_s1  ;;  %v2237_v15 = vmax.f32 %v1766_v0, %v763_v20  ;;  %v768_v53 = vstv %s2169_s21  ;;  %v773_v33 = vstv %s2175_s0  ;;  %s2271_s8 = sld [smem:[#allocation7 + $0x24]]  ;;  %s2273_s11 = sld [smem:[#allocation7 + $0x25]] }
  0xb3   : > { %v542_v50 = vadd.f32 %v541_v22, %v532_v41  ;;  %v547_v35 = vadd.f32 %v546_v40, %v537_v12  ;;  %v561_v46 = vmul.f32 %v560_v30, %v1930_v54  ;;  %v566_v8 = vmul.f32 %v565_v27, %v1933_v55  ;;  %s2281_s29 = sld [smem:[#allocation2 + $0x46]]  ;;  %s2287_s12 = sld [smem:[#allocation2 + $0x47]] }
  0xb4   : > { %v571_v14 = vmul.f32 %v570_v34, %v1942_v58  ;;  %v580_v16 = vstv %s2189_s3  ;;  %v585_v17 = vstv %s2191_s17  ;;  %v778_v57 = vstv %s2185_s2  ;;  %s2283_s21 = sld [smem:[#allocation7 + $0x26]]  ;;  %s2289_s0 = sld [smem:[#allocation7 + $0x27]] }
  0xb5   : > { %v552_v61 = vadd.f32 %v551_v11, %v542_v50  ;;  %v557_v6 = vadd.f32 %v556_v42, %v547_v35  ;;  %v576_v18 = vmul.f32 %v575_v43, %v1945_v59  ;;  %v590_v54 = vstv %s2197_s10  ;;  %s2297_s1 = sld [smem:[#allocation2 + $0x48]]  ;;  %s2303_s3 = sld [smem:[#allocation7 + $0x29]] }
  0xb6   : > { %v595_v55 = vstv %s2203_s13  ;;  %v2263_v36 = vmax.f32 %v1766_v0, %v768_v53  ;;  %v2266_v58 = vmax.f32 %v1766_v0, %v773_v33  ;;  %v783_v38 = vstv %s2201_s30  ;;  %s2301_s2 = sld [smem:[#allocation7 + $0x28]]  ;;  %s2309_s17 = sld [smem:[#allocation7 + $0x2a]] }
  0xb7   : > { %v562_v20 = vadd.f32 %v561_v46, %v552_v61  ;;  %v567_v13 = vadd.f32 %v566_v8, %v557_v6  ;;  %v581_v19 = vmul.f32 %v580_v16, %v1948_v60  ;;  %v586_v59 = vmul.f32 %v585_v17, %v1956_v62  ;;  %s2313_s10 = sld [smem:[#allocation2 + $0x49]]  ;;  %s2315_s30 = sld [smem:[#allocation7 + $0x2b]] }
  0xb8   : > { %v591_v22 = vmul.f32 %v590_v54, %v1959_v63  ;;  %v600_v40 = vstv %s2215_s20  ;;  %v605_v11 = vstv %s2217_s16  ;;  %v2279_v30 = vmax.f32 %v1766_v0, %v778_v57  ;;  %s2327_s13 = sld [smem:[#allocation7 + $0x2c]]  ;;  %s2329_s20 = sld [smem:[#allocation7 + $0x2d]] }
  0xb9   : > { %v572_v60 = vadd.f32 %v571_v14, %v562_v20  ;;  %v577_v27 = vadd.f32 %v576_v18, %v567_v13  ;;  %v596_v62 = vmul.f32 %v595_v55, %v1962_v1  ;;  %v610_v41 = vstv %s2227_s18  ;;  %s2337_s16 = sld [smem:[#allocation2 + $0x4a]]  ;;  %s2343_s18 = sld [smem:[#allocation2 + $0x4b]] }
  0xba   : > { %v615_v63 = vstv %s2233_s25  ;;  %v2293_v12 = vmax.f32 %v1766_v0, %v783_v38  ;;  %v788_v42 = vstv %s2225_s5  ;;  %v793_v34 = vstv %s2231_s22  ;;  %s2339_s5 = sld [smem:[#allocation7 + $0x2e]]  ;;  %s2345_s22 = sld [smem:[#allocation7 + $0x2f]] }
  0xbb   : > { %v582_v43 = vadd.f32 %v581_v19, %v572_v60  ;;  %v587_v53 = vadd.f32 %v586_v59, %v577_v27  ;;  %v601_v1 = vmul.f32 %v600_v40, %v1965_v2  ;;  %v606_v33 = vmul.f32 %v605_v11, %v1972_v3  ;;  %s2353_s25 = sld [smem:[#allocation2 + $0x4c]]  ;;  %p2828_p5 = scmp.ne.s32.totalorder %s2803_s7, 0 }
  0xbc   : > { %v611_v50 = vmul.f32 %v610_v41, %v1975_v4  ;;  %v620_v35 = vstv %s2245_s27  ;;  %v625_v46 = vstv %s2247_s28  ;;  %v798_v8 = vstv %s2241_s24  ;;  %s2357_s24 = sld [smem:[#allocation7 + $0x30]]  ;;  %s2359_s27 = sld [smem:[#allocation7 + $0x31]] }
  0xbd   : > { %v592_v14 = vadd.f32 %v591_v22, %v582_v43  ;;  %v597_v16 = vadd.f32 %v596_v62, %v587_v53  ;;  %v616_v17 = vmul.f32 %v615_v63, %v1984_v7  ;;  %v630_v2 = vstv %s2253_s26  ;;  %s2365_s28 = sld [smem:[#allocation7 + $0x32]]  ;;  %s2369_s26 = sld [smem:[#allocation2 + $0x4d]] }
  0xbe   : > { %v635_v3 = vstv %s2259_s9  ;;  %v2319_v57 = vmax.f32 %v1766_v0, %v788_v42  ;;  %v2322_v4 = vmax.f32 %v1766_v0, %v793_v34  ;;  %v803_v61 = vstv %s2257_s6  ;;  %s2371_s6 = sld [smem:[#allocation7 + $0x33]]  ;;  %s2383_s9 = sld [smem:[#allocation7 + $0x34]] }
  0xbf   : > { %v602_v6 = vadd.f32 %v601_v1, %v592_v14  ;;  %v607_v18 = vadd.f32 %v606_v33, %v597_v16  ;;  %v621_v54 = vmul.f32 %v620_v35, %v1996_v24  ;;  %v626_v7 = vmul.f32 %v625_v46, %v1999_v25 }
  0xc0   : > { %v631_v55 = vmul.f32 %v630_v2, %v2006_v28  ;;  %v640_v38 = vstv %s2271_s8  ;;  %v645_v20 = vstv %s2273_s11  ;;  %v2335_v13 = vmax.f32 %v1766_v0, %v798_v8  ;;  %s2385_s8 = sld [smem:[#allocation7 + $0x35]]  ;;  %s2393_s11 = sld [smem:[#allocation2 + $0x4e]] }
  0xc1   : > { %v612_v24 = vadd.f32 %v611_v50, %v602_v6  ;;  %v617_v19 = vadd.f32 %v616_v17, %v607_v18  ;;  %v636_v25 = vmul.f32 %v635_v3, %v2009_v29  ;;  %v650_v59 = vstv %s2283_s21  ;;  %s2399_s21 = sld [smem:[#allocation2 + $0x4f]] }
  0xc2   : > { %v655_v28 = vstv %s2289_s0  ;;  %v2349_v22 = vmax.f32 %v1766_v0, %v803_v61  ;;  %v808_v40 = vstv %s2281_s29  ;;  %v813_v11 = vstv %s2287_s12  ;;  %s2395_s29 = sld [smem:[#allocation7 + $0x36]]  ;;  %s2401_s12 = sld [smem:[#allocation7 + $0x37]] }
  0xc3   : > { %v622_v60 = vadd.f32 %v621_v54, %v612_v24  ;;  %v627_v27 = vadd.f32 %v626_v7, %v617_v19  ;;  %v641_v29 = vmul.f32 %v640_v38, %v2012_v32  ;;  %v646_v62 = vmul.f32 %v645_v20, %v2018_v37  ;;  %s2409_s0 = sld [smem:[#allocation2 + $0x50]] }
  0xc4   : > { %v651_v41 = vmul.f32 %v650_v59, %v2021_v44  ;;  %v660_v63 = vstv %s2301_s2  ;;  %v665_v42 = vstv %s2303_s3  ;;  %v818_v34 = vstv %s2297_s1  ;;  %s2413_s1 = sld [smem:[#allocation7 + $0x38]]  ;;  %s2415_s2 = sld [smem:[#allocation7 + $0x39]] }
  0xc5   : > { %v632_v43 = vadd.f32 %v631_v55, %v622_v60  ;;  %v637_v53 = vadd.f32 %v636_v25, %v627_v27  ;;  %v656_v1 = vmul.f32 %v655_v28, %v2024_v45  ;;  %v670_v32 = vstv %s2309_s17  ;;  %s2421_s3 = sld [smem:[#allocation7 + $0x3a]]  ;;  %s2425_s17 = sld [smem:[#allocation2 + $0x51]] }
  0xc6   : > { %v675_v37 = vstv %s2315_s30  ;;  %v2375_v33 = vmax.f32 %v1766_v0, %v808_v40  ;;  %v2378_v44 = vmax.f32 %v1766_v0, %v813_v11  ;;  %v823_v50 = vstv %s2313_s10  ;;  %s2427_s10 = sld [smem:[#allocation7 + $0x3b]]  ;;  %s2439_s30 = sld [smem:[#allocation7 + $0x3c]] }
  0xc7   : > { %v642_v35 = vadd.f32 %v641_v29, %v632_v43  ;;  %v647_v46 = vadd.f32 %v646_v62, %v637_v53  ;;  %v661_v8 = vmul.f32 %v660_v63, %v2027_v47  ;;  %v666_v45 = vmul.f32 %v665_v42, %v2034_v48  ;;  %v2821_v63 = vld [vmem:[#allocation24_spill] sm:$0xff] }
  0xc8   : > { %v671_v14 = vmul.f32 %v670_v32, %v2037_v49  ;;  %v680_v16 = vstv %s2327_s13  ;;  %v685_v17 = vstv %s2329_s20  ;;  %v2391_v2 = vmax.f32 %v1766_v0, %v818_v34  ;;  %s2441_s13 = sld [smem:[#allocation7 + $0x3d]]  ;;  %s2449_s20 = sld [smem:[#allocation2 + $0x52]]  ;;  %v2822_v32 = vld [vmem:[#allocation25_spill] sm:$0xff] }
  0xc9   : > { %v652_v47 = vadd.f32 %v651_v41, %v642_v35  ;;  %v657_v3 = vadd.f32 %v656_v1, %v647_v46  ;;  %v676_v48 = vmul.f32 %v675_v37, %v2046_v52  ;;  %v690_v61 = vstv %s2339_s5  ;;  %s2455_s5 = sld [smem:[#allocation2 + $0x53]] }
  0xca   : > { %v695_v49 = vstv %s2345_s22  ;;  %v2405_v6 = vmax.f32 %v1766_v0, %v823_v50  ;;  %v828_v18 = vstv %s2337_s16  ;;  %v833_v54 = vstv %s2343_s18  ;;  %s2451_s16 = sld [smem:[#allocation7 + $0x3e]]  ;;  %s2457_s18 = sld [smem:[#allocation7 + $0x3f]] }
  0xcb   : > { %v662_v7 = vadd.f32 %v661_v8, %v652_v47  ;;  %v667_v55 = vadd.f32 %v666_v45, %v657_v3  ;;  %v681_v52 = vmul.f32 %v680_v16, %v2064_v9  ;;  %v686_v38 = vmul.f32 %v685_v17, %v2067_v10  ;;  %s2465_s22 = sld [smem:[#allocation2 + $0x54]]  ;;  %v2823_v17 = vld [vmem:[#allocation26_spill] sm:$0xff]  ;;  %v2824_v3 = vld [vmem:[#allocation27_spill] sm:$0xff] }
  0xcc   : > { %v691_v20 = vmul.f32 %v690_v61, %v2076_v21  ;;  %v700_v24 = vstv %s2357_s24  ;;  %v705_v19 = vstv %s2359_s27  ;;  %v838_v25 = vstv %s2353_s25  ;;  %s2469_s25 = sld [smem:[#allocation7 + $0x40]]  ;;  %s2471_s24 = sld [smem:[#allocation7 + $0x41]]  ;;  %v2825_v61 = vld [vmem:[#allocation28_spill] sm:$0xff] }
  0xcd   : > { %v672_v59 = vadd.f32 %v671_v14, %v662_v7  ;;  %v677_v28 = vadd.f32 %v676_v48, %v667_v55  ;;  %v696_v40 = vmul.f32 %v695_v49, %v2079_v23  ;;  %v710_v9 = vstv %s2365_s28  ;;  %v2820_v23 = vld [vmem:[#allocation23_spill] sm:$0xff]  ;;  %s2477_s27 = sld [smem:[#allocation7 + $0x42]]  ;;  %s2481_s28 = sld [smem:[#allocation2 + $0x55]] }
  0xce   : > { %v715_v10 = vstv %s2371_s6  ;;  %v2431_v11 = vmax.f32 %v1766_v0, %v828_v18  ;;  %v2434_v21 = vmax.f32 %v1766_v0, %v833_v54  ;;  %v843_v60 = vstv %s2369_s26  ;;  %s2483_s26 = sld [smem:[#allocation7 + $0x43]]  ;;  %s2495_s6 = sld [smem:[#allocation7 + $0x44]] }
  0xcf   : > { %v682_v27 = vadd.f32 %v681_v52, %v672_v59  ;;  %v687_v29 = vadd.f32 %v686_v38, %v677_v28  ;;  %v701_v62 = vmul.f32 %v700_v24, %v2082_v26  ;;  %v706_v41 = vmul.f32 %v705_v19, %v2820_v23  ;;  %v2826_v38 = vld [vmem:[#allocation29_spill] sm:$0xff] }
  0xd0   : > { %v711_v42 = vmul.f32 %v710_v9, %v2821_v63  ;;  %v720_v34 = vstv %s2383_s9  ;;  %v725_v43 = vstv %s2385_s8  ;;  %v2447_v53 = vmax.f32 %v1766_v0, %v838_v25  ;;  %s2497_s9 = sld [smem:[#allocation7 + $0x45]]  ;;  %s2505_s8 = sld [smem:[#allocation2 + $0x56]] }
  0xd1   : > { %v692_v26 = vadd.f32 %v691_v20, %v682_v27  ;;  %v697_v1 = vadd.f32 %v696_v40, %v687_v29  ;;  %v716_v37 = vmul.f32 %v715_v10, %v2822_v32  ;;  %v730_v50 = vstv %s2395_s29  ;;  %s2511_s29 = sld [smem:[#allocation2 + $0x57]] }
  0xd2   : > { %v735_v35 = vstv %s2401_s12  ;;  %v2461_v46 = vmax.f32 %v1766_v0, %v843_v60  ;;  %v848_v8 = vstv %s2393_s11  ;;  %v853_v45 = vstv %s2399_s21  ;;  %s2507_s11 = sld [smem:[#allocation7 + $0x46]]  ;;  %s2513_s21 = sld [smem:[#allocation7 + $0x47]] }
  0xd3   : > { %v702_v14 = vadd.f32 %v701_v62, %v692_v26  ;;  %v707_v16 = vadd.f32 %v706_v41, %v697_v1  ;;  %v721_v47 = vmul.f32 %v720_v34, %v2823_v17  ;;  %v726_v48 = vmul.f32 %v725_v43, %v2824_v3  ;;  %s2521_s12 = sld [smem:[#allocation2 + $0x58]] }
  0xd4   : > { %v731_v49 = vmul.f32 %v730_v50, %v2825_v61  ;;  %v740_v18 = vstv %s2413_s1  ;;  %v745_v54 = vstv %s2415_s2  ;;  %v858_v7 = vstv %s2409_s0  ;;  %s2525_s0 = sld [smem:[#allocation7 + $0x48]]  ;;  %s2527_s1 = sld [smem:[#allocation7 + $0x49]] }
  0xd5   : > { %v712_v55 = vadd.f32 %v711_v42, %v702_v14  ;;  %v717_v52 = vadd.f32 %v716_v37, %v707_v16  ;;  %v736_v20 = vmul.f32 %v735_v35, %v2826_v38  ;;  %v750_v24 = vstv %s2421_s3  ;;  %s2533_s2 = sld [smem:[#allocation7 + $0x4a]]  ;;  %s2537_s3 = sld [smem:[#allocation2 + $0x59]]  ;;  %v2543_v16 = vld [vmem:[%s1731_s14] sm:$0xff] }
  0xd6   : > { %v755_v19 = vstv %s2427_s10  ;;  %v2487_v25 = vmax.f32 %v1766_v0, %v848_v8  ;;  %v2490_v59 = vmax.f32 %v1766_v0, %v853_v45  ;;  %v863_v28 = vstv %s2425_s17  ;;  %s2539_s17 = sld [smem:[#allocation7 + $0x4b]]  ;;  %s2554_s10 = sld [smem:[#allocation7 + $0x4c]] }
  0xd7   : > { %v722_v40 = vadd.f32 %v721_v47, %v712_v55  ;;  %v727_v9 = vadd.f32 %v726_v48, %v717_v52  ;;  %v741_v10 = vmul.f32 %v740_v18, %v2167_v56  ;;  %v746_v60 = vmul.f32 %v745_v54, %v2181_v5  ;;  %s2556_s14 = sld [smem:[#allocation7 + $0x4d]] }
  0xd8   : > { %v751_v27 = vmul.f32 %v750_v24, %v2207_v51  ;;  %v760_v29 = vstv %s2439_s30  ;;  %v765_v62 = vstv %s2441_s13  ;;  %v2503_v23 = vmax.f32 %v1766_v0, %v858_v7  ;;  %s2564_s30 = sld [smem:[#allocation2 + $0x5a]]  ;;  %s2566_s13 = sld [smem:[#allocation7 + $0x4e]] }
  0xd9   : > { %v732_v56 = vadd.f32 %v731_v49, %v722_v40  ;;  %v737_v41 = vadd.f32 %v736_v20, %v727_v9  ;;  %v756_v5 = vmul.f32 %v755_v19, %v2210_v39  ;;  %v770_v63 = vstv %s2451_s16  ;;  %s2572_s16 = sld [smem:[#allocation7 + $0x4f]] }
  0xda   : > { %v775_v51 = vstv %s2457_s18  ;;  %v2517_v42 = vmax.f32 %v1766_v0, %v863_v28  ;;  %v868_v34 = vstv %s2449_s20  ;;  %v873_v43 = vstv %s2455_s5  ;;  %s2570_s20 = sld [smem:[#allocation2 + $0x5b]]  ;;  %s2580_s5 = sld [smem:[#allocation2 + $0x5c]] }
  0xdb   : > { %v742_v26 = vadd.f32 %v741_v10, %v732_v56  ;;  %v747_v1 = vadd.f32 %v746_v60, %v737_v41  ;;  %v761_v39 = vmul.f32 %v760_v29, %v2223_v31  ;;  %v766_v32 = vmul.f32 %v765_v62, %v2237_v15  ;;  %s2584_s18 = sld [smem:[#allocation7 + $0x50]] }
  0xdc   : > { %v771_v0 = vmul.f32 %v770_v63, %v2263_v36  ;;  %v780_v37 = vstv %s2469_s25  ;;  %v785_v50 = vstv %s2471_s24  ;;  %v878_v35 = vstv %s2465_s22  ;;  %s2586_s22 = sld [smem:[#allocation7 + $0x51]]  ;;  %s2592_s25 = sld [smem:[#allocation7 + $0x52]] }
  0xdd   : > { %v752_v8 = vadd.f32 %v751_v27, %v742_v26  ;;  %v757_v45 = vadd.f32 %v756_v5, %v747_v1  ;;  %v776_v14 = vmul.f32 %v775_v51, %v2266_v58  ;;  %v790_v31 = vstv %s2477_s27  ;;  %s2596_s24 = sld [smem:[#allocation2 + $0x5d]]  ;;  %s2598_s27 = sld [smem:[#allocation7 + $0x53]] }
  0xde   : > { %v795_v15 = vstv %s2483_s26  ;;  %v2546_v36 = vmax.f32 %v2543_v16, %v868_v34  ;;  %v2549_v17 = vmax.f32 %v2543_v16, %v873_v43  ;;  %v883_v47 = vstv %s2481_s28  ;;  %s2610_s28 = sld [smem:[#allocation7 + $0x54]]  ;;  %s2612_s26 = sld [smem:[#allocation7 + $0x55]] }
  0xdf   : > { %v762_v3 = vadd.f32 %v761_v39, %v752_v8  ;;  %v767_v58 = vadd.f32 %v766_v32, %v757_v45  ;;  %v781_v48 = vmul.f32 %v780_v37, %v2279_v30  ;;  %v786_v61 = vmul.f32 %v785_v50, %v2293_v12 }
  0xe0   : > { %v791_v49 = vmul.f32 %v790_v31, %v2319_v57  ;;  %v800_v18 = vstv %s2495_s6  ;;  %v805_v54 = vstv %s2497_s9  ;;  %v2562_v7 = vmax.f32 %v2543_v16, %v878_v35  ;;  %s2620_s6 = sld [smem:[#allocation2 + $0x5e]] }
  0xe1   : > { %v772_v30 = vadd.f32 %v771_v0, %v762_v3  ;;  %v777_v55 = vadd.f32 %v776_v14, %v767_v58  ;;  %v796_v12 = vmul.f32 %v795_v15, %v2322_v4  ;;  %v810_v52 = vstv %s2507_s11  ;;  %s2622_s9 = sld [smem:[#allocation7 + $0x56]]  ;;  %s2628_s11 = sld [smem:[#allocation7 + $0x57]] }
  0xe2   : > { %v815_v57 = vstv %s2513_s21  ;;  %v2576_v38 = vmax.f32 %v2543_v16, %v883_v47  ;;  %v888_v20 = vstv %s2505_s8  ;;  %v893_v24 = vstv %s2511_s29  ;;  %s2626_s8 = sld [smem:[#allocation2 + $0x5f]]  ;;  %s2636_s29 = sld [smem:[#allocation2 + $0x60]] }
  0xe3   : > { %v782_v19 = vadd.f32 %v781_v48, %v772_v30  ;;  %v787_v28 = vadd.f32 %v786_v61, %v777_v55  ;;  %v801_v4 = vmul.f32 %v800_v18, %v2335_v13  ;;  %v806_v40 = vmul.f32 %v805_v54, %v2349_v22  ;;  %s2640_s21 = sld [smem:[#allocation7 + $0x58]] }
  0xe4   : > { %v811_v9 = vmul.f32 %v810_v52, %v2375_v33  ;;  %v820_v10 = vstv %s2525_s0  ;;  %v825_v60 = vstv %s2527_s1  ;;  %v898_v27 = vstv %s2521_s12  ;;  %s2642_s12 = sld [smem:[#allocation7 + $0x59]]  ;;  %s2648_s0 = sld [smem:[#allocation7 + $0x5a]] }
  0xe5   : > { %v792_v29 = vadd.f32 %v791_v49, %v782_v19  ;;  %v797_v62 = vadd.f32 %v796_v12, %v787_v28  ;;  %v816_v56 = vmul.f32 %v815_v57, %v2378_v44  ;;  %v830_v13 = vstv %s2533_s2  ;;  %s2652_s1 = sld [smem:[#allocation2 + $0x61]]  ;;  %s2654_s2 = sld [smem:[#allocation7 + $0x5b]] }
  0xe6   : > { %v835_v22 = vstv %s2539_s17  ;;  %v2602_v41 = vmax.f32 %v2543_v16, %v888_v20  ;;  %v2605_v33 = vmax.f32 %v2543_v16, %v893_v24  ;;  %v903_v5 = vstv %s2537_s3  ;;  %s2660_s3 = sld [smem:[#allocation2 + $0x62]]  ;;  %s2664_s17 = sld [smem:[#allocation7 + $0x5c]] }
  0xe7   : > { %v802_v63 = vadd.f32 %v801_v4, %v792_v29  ;;  %v807_v51 = vadd.f32 %v806_v40, %v797_v62  ;;  %v821_v34 = vmul.f32 %v820_v10, %v2391_v2  ;;  %v826_v44 = vmul.f32 %v825_v60, %v2405_v6 }
  0xe8   : > { %v831_v43 = vmul.f32 %v830_v13, %v2431_v11  ;;  %v840_v26 = vstv %s2554_s10  ;;  %v845_v1 = vstv %s2556_s14  ;;  %v2618_v39 = vmax.f32 %v2543_v16, %v898_v27  ;;  %s2666_s10 = sld [smem:[#allocation7 + $0x5d]]  ;;  %s2672_s14 = sld [smem:[#allocation7 + $0x5e]] }
  0xe9   : > { %v812_v2 = vadd.f32 %v811_v9, %v802_v63  ;;  %v817_v32 = vadd.f32 %v816_v56, %v807_v51  ;;  %v836_v6 = vmul.f32 %v835_v22, %v2434_v21  ;;  %v850_v0 = vstv %s2566_s13  ;;  %s2678_s13 = sld [smem:[#allocation7 + $0x5f]] }
  0xea   : > { %v855_v11 = vstv %s2572_s16  ;;  %v2632_v37 = vmax.f32 %v2543_v16, %v903_v5  ;;  %v908_v50 = vstv %s2564_s30  ;;  %v913_v35 = vstv %s2570_s20  ;;  %s2676_s30 = sld [smem:[#allocation2 + $0x63]]  ;;  %s2686_s20 = sld [smem:[#allocation7 + $0x60]] }
  0xeb   : > { %v822_v8 = vadd.f32 %v821_v34, %v812_v2  ;;  %v827_v45 = vadd.f32 %v826_v44, %v817_v32  ;;  %v841_v21 = vmul.f32 %v840_v26, %v2447_v53  ;;  %v846_v14 = vmul.f32 %v845_v1, %v2461_v46  ;;  %s2688_s16 = sld [smem:[#allocation7 + $0x61]] }
  0xec   : > { %v851_v31 = vmul.f32 %v850_v0, %v2487_v25  ;;  %v860_v15 = vstv %s2584_s18  ;;  %v865_v47 = vstv %s2586_s22  ;;  %v918_v3 = vstv %s2580_s5  ;;  %s2696_s5 = sld [smem:[#allocation7 + $0x62]]  ;;  %s2698_s18 = sld [smem:[#allocation7 + $0x63]] }
  0xed   : > { %v832_v58 = vadd.f32 %v831_v43, %v822_v8  ;;  %v837_v48 = vadd.f32 %v836_v6, %v827_v45  ;;  %v856_v61 = vmul.f32 %v855_v11, %v2490_v59  ;;  %v870_v53 = vstv %s2592_s25  ;;  %s1294_s22 = sshll.u32 %s1579_s19, 7  ;;  %s2827_s25 = sshll.u32 %s1725_s23, 3 }
  0xee   : > { %v875_v46 = vstv %s2598_s27  ;;  %v909_v49 = vmax.f32 %v2543_v16, %v908_v50  ;;  %v914_v25 = vmax.f32 %v2543_v16, %v913_v35  ;;  %v923_v18 = vstv %s2596_s24  ;;  %s250_s24 = scalar_lea.vmem [#allocation11], %s2827_s25  ;;  %s1532_s19 = smov [#allocation11]  }
  0xef   : > { %v842_v54 = vadd.f32 %v841_v21, %v832_v58  ;;  %v847_v30 = vadd.f32 %v846_v14, %v837_v48  ;;  %v861_v59 = vmul.f32 %v860_v15, %v2503_v23  ;;  %v866_v55 = vmul.f32 %v865_v47, %v2517_v42  ;;  %s976_s27 = sshll.u32 %s250_s24, 4  ;;  %s2728_s27 = int_to_ptr.vmem [resolvable:$true] %s976_s27 }
  0xf0   : > { %v871_v12 = vmul.f32 %v870_v53, %v2546_v36  ;;  %v880_v52 = vstv %s2610_s28  ;;  %v885_v57 = vstv %s2612_s26  ;;  %v919_v20 = vmax.f32 %v2543_v16, %v918_v3 }
  0xf1   : > { %v852_v24 = vadd.f32 %v851_v31, %v842_v54  ;;  %v857_v19 = vadd.f32 %v856_v61, %v847_v30  ;;  %v876_v23 = vmul.f32 %v875_v46, %v2549_v17  ;;  %v890_v42 = vstv %s2622_s9  ;;  %s963_s9 = scalar_lea.sflag [#allocation4], %s1725_s23 }
  0xf2   : > { %v895_v28 = vstv %s2628_s11  ;;  %v924_v36 = vmax.f32 %v2543_v16, %v923_v18  ;;  %v928_v4 = vstv %s2620_s6  ;;  %v933_v40 = vstv %s2626_s8  ;;  %s2726_s6 = scalar_lea.hbm %s2774_s4, %s1294_s22  ;;  %s1448_s8 = scalar_lea.vmem %s2728_s27, 128 }
  0xf3   : > { %v862_v9 = vadd.f32 %v861_v59, %v852_v24  ;;  %v867_v10 = vadd.f32 %v866_v55, %v857_v19  ;;  %v881_v60 = vmul.f32 %v880_v52, %v2562_v7  ;;  %v886_v17 = vmul.f32 %v885_v57, %v2576_v38  ;;  %p1449_p3 = scmp.ne.s32.totalorder %s2728_s27, %s1448_s8  ;;  %s1452_s11 = sshll.u32 %s1532_s19, 4  ;;  %s1453_s11 = int_to_ptr.vmem [resolvable:$false] %s1452_s11 }
  0xf4   : > { %v891_v27 = vmul.f32 %v890_v42, %v2602_v41  ;;  %v900_v29 = vstv %s2640_s21  ;;  %v905_v62 = vstv %s2642_s12  ;;  %v938_v56 = vstv %s2636_s29  ;;  %s1454_s29 = scalar_lea.vmem %s1453_s11, 256  ;;  %p1455_p6 = scmp.lt.s32.totalorder %s2728_s27, %s1453_s11 }
  0xf5   : > { %v872_v13 = vadd.f32 %v871_v12, %v862_v9  ;;  %v877_v22 = vadd.f32 %v876_v23, %v867_v10  ;;  %v896_v5 = vmul.f32 %v895_v28, %v2605_v33  ;;  %v910_v7 = vstv %s2648_s0  ;;  %p1450_p10 = pnand %p1449_p3, %p2828_p5  ;;  %p1456_p9 = scmp.lt.s32.totalorder %s1454_s29, %s1448_s8 }
  0xf6   : > { %v915_v38 = vstv %s2654_s2  ;;  %v929_v41 = vmax.f32 %v2543_v16, %v928_v4  ;;  %v934_v63 = vmax.f32 %v2543_v16, %v933_v40  ;;  %v943_v51 = vstv %s2652_s1 }
  0xf7   : > { %v882_v34 = vadd.f32 %v881_v60, %v872_v13  ;;  %v887_v44 = vadd.f32 %v886_v17, %v877_v22  ;;  %v901_v43 = vmul.f32 %v900_v29, %v2618_v39  ;;  %v906_v33 = vmul.f32 %v905_v62, %v2632_v37  ;;  %p1451_p1 = pneg %p1450_p10  ;;  %p1457_p13 = por %p1456_p9, %p1455_p6 }
  0xf8   : > { %v911_v26 = vmul.f32 %v910_v7, %v909_v49  ;;  %v920_v1 = vstv %s2664_s17  ;;  %v925_v2 = vstv %s2666_s10  ;;  %v948_v32 = vstv %s2660_s3 }
  0xf9   : > { %v892_v6 = vadd.f32 %v891_v27, %v882_v34  ;;  %v897_v0 = vadd.f32 %v896_v5, %v887_v44  ;;  %v916_v11 = vmul.f32 %v915_v38, %v914_v25  ;;  %v930_v50 = vstv %s2672_s14  ;;  %p1458_p12 = pnand %p1457_p13, %p1451_p1 }
  0xfa   : > { %v935_v35 = vstv %s2678_s13  ;;  %v939_v8 = vmax.f32 %v2543_v16, %v938_v56  ;;  %v944_v45 = vmax.f32 %v2543_v16, %v943_v51  ;;  %v953_v39 = vstv %s2676_s30 }
  0xfb   : > { %v902_v21 = vadd.f32 %v901_v43, %v892_v6  ;;  %v907_v37 = vadd.f32 %v906_v33, %v897_v0  ;;  %v921_v14 = vmul.f32 %v920_v1, %v919_v20  ;;  %v926_v31 = vmul.f32 %v925_v2, %v924_v36 }
  0xfc   : > { %v931_v15 = vmul.f32 %v930_v50, %v929_v41  ;;  %v940_v47 = vstv %s2686_s20  ;;  %v945_v3 = vstv %s2688_s16  ;;  %v949_v58 = vmax.f32 %v2543_v16, %v948_v32 }
  0xfd   : > { %v912_v48 = vadd.f32 %v911_v26, %v902_v21  ;;  %v917_v61 = vadd.f32 %v916_v11, %v907_v37  ;;  %v936_v53 = vmul.f32 %v935_v35, %v934_v63  ;;  %v954_v46 = vmax.f32 %v2543_v16, %v953_v39 }
  0xfe   : > { %v950_v49 = vstv %s2696_s5  ;;  %v955_v25 = vstv %s2698_s18  ;;  %v941_v30 = vmul.f32 %v940_v47, %v939_v8  ;;  %v946_v59 = vmul.f32 %v945_v3, %v944_v45 }
  0xff   : > { %v922_v18 = vadd.f32 %v921_v14, %v912_v48  ;;  %v927_v54 = vadd.f32 %v926_v31, %v917_v61  ;;  %v951_v52 = vmul.f32 %v950_v49, %v949_v58  ;;  %v956_v57 = vmul.f32 %v955_v25, %v954_v46 }
 0x101   : > { %v932_v55 = vadd.f32 %v931_v15, %v922_v18  ;;  %v937_v12 = vadd.f32 %v936_v53, %v927_v54 }
 0x103   : > { %v942_v20 = vadd.f32 %v941_v30, %v932_v55  ;;  %v947_v24 = vadd.f32 %v946_v59, %v937_v12 }
 0x105   : > { %v952_v19 = vadd.f32 %v951_v52, %v942_v20  ;;  %v957_v23 = vadd.f32 %v956_v57, %v947_v24 }
 0x107   : > { %v958_v42 = vadd.f32 %v957_v23, %v952_v19 }
 0x109   : > { %v959_v16 = vmax.f32 %v958_v42, 0.0 }
 0x10b   : > { %v960_v28 = vmin.f32 %v959_v16, 1.0 }
 0x10d   : > { %961 = vst [vmem:[%s250_s24] sm:$0xff] %v960_v28 }
 0x10e   : > { %1461 = shalt.err (!%p1458_p12)
}
 0x10f   : > { %s1462_s23 = scalar_lea.hbm %s2726_s6, 128  ;;  %s1466_s0 = scalar_lea.hbm %s2774_s4, 256 }
 0x110   : > { %p1463_p2 = scmp.ne.s32.totalorder %s2726_s6, %s1462_s23  ;;  %p1467_p7 = scmp.lt.u32.totalorder %s2726_s6, %s2774_s4 }
 0x111   : > { %p1468_p11 = scmp.lt.u32.totalorder %s1466_s0, %s1462_s23  ;;  %p1470_p3 = scmp.lt.u32.totalorder %s1462_s23, %s2726_s6 }
 0x112   : > { %p1464_p0 = pnand %p1463_p2, %p2828_p5 }
 0x113   : > { %p1469_p8 = por %p1468_p11, %p1467_p7 }
 0x114   : > { %p1465_p4 = pneg %p1464_p0 }
 0x115   : > { %p1471_p10 = por %p1470_p3, %p1469_p8 }
 0x117   : > { %p1472_p1 = pnand %p1471_p10, %p1465_p4 }
 0x119   : > { %1475 = shalt.err (!%p1472_p1)
}
 0x11a   : > { %1311 = dma.vmem_to_hbm [thread:$0]  (%p2828_p5), %s2728_s27, 128, %s2726_s6, %s963_s9  }
 0x11b PF: > { %s2829_s3 = sld [smem:[#allocation20_spill]]  ;;  %s2830_s17 = sld [smem:[#allocation19_spill]] }
 0x11c   : > { %s988_s10 = sand.u32 1, %s1514_s15  }
 0x11d   : > { %s989_s14 = scalar_lea.sflag [#allocation4], %s988_s10 }
 0x121   : > { %p2831_p6 = scmp.ne.s32.totalorder %s2829_s3, 0  ;;  %p2832_p9 = scmp.ge.s32.totalorder %s2830_s17, 2 }
 0x123   : > { %p1328_p13 = pnand %p2832_p9, %p2831_p6 }
 0x125   : > { %1509 = dma.done.wait (!%p1328_p13), %s989_s14, 128  }
 0x126   : > { %1511 = vsyncadd (!%p1328_p13), %s989_s14, 4294967168  ;;  %s2833_s18 = sld [smem:[#allocation21_spill]]  ;;  %s2834_s15 = sld [smem:[#allocation17_spill]] }
 0x127   : > { %s2835_s16 = sld [smem:[#allocation18_spill]]  ;;  %s2836_s17 = sld [smem:[#allocation22_spill]] }
 0x12c   : > { %p20_p12 = scmp.ge.s32.totalorder %s2833_s18, 4  }
 0x12e   :  { %22 = sbr.rel (!%p20_p12) target bundleno = 13 (0xd), region = 95 }
 0x135   :  { %994 = vsyncpa [#allocation3], 1 }
 0x136   :  { %996 = vsyncpa [#allocation3 + $0x1], 1 }
 0x137   :  { %997 = vsyncpa [#allocation4], 1 }
 0x138   :  { %999 = vsyncpa [#allocation4 + $0x1], 1 }
 0x139   :  { %1000 = vsyncpa [#allocation5], 1 }
 0x13a   :  { %1002 = vsyncpa [#allocation5 + $0x1], 1 }
 0x13b   :  { %1003 = vsyncpa [#allocation6], 1 }
 0x13c   :  { %1005 = vsyncpa [#allocation6 + $0x1], 1 }
 0x13d   :  { %1006 = vsyncpa [#allocation9], 1 }

</bundles_post_ra>
